<compile_context>
chip_gen: v5e
topology: v5e:2x2
jax: 0.10.0
libtpu: 0.0.40
codegen_flags: <defaults>
</compile_context>

<pallas_src>
import functools

import jax
import jax.numpy as jnp
import numpy as np
from jax.experimental import pallas as pl
from jax.experimental.pallas import tpu as pltpu


# ----------------------------------------------------------------------------
# Fused kernel
# ----------------------------------------------------------------------------
def _tcn_kernel(*refs, K, dilations, has_down, pad_rows, L):
    """One program = BB batch rows (stacked batch-major along sublanes).

    refs = [x_rows, per-block weights..., dense_wp, dense_b, out].
    Activation layout is a 2-D (BB*L, C) slab: row b*L + t = (batch b, time t).
    Causal padding = in-register zero block + static sublane slices; every
    conv tap / residual is a single batched MXU dot.
    """
    x_ref = refs[0]
    o_ref = refs[-1]
    wrefs = refs[1:-1]

    act = x_ref[...].astype(jnp.float32)          # (BB*L, Cin0)
    rows = act.shape[0]
    BB = rows // L

    def causal_conv(x2, w_ref, b_ref, d):
        # x2: (BB*L, Cin) f32.  w_ref: (K, Cin, Cout) bf16.  b_ref: (1, Cout) f32.
        cin = x2.shape[1]
        cout = w_ref.shape[2]
        zpad = jnp.zeros((pad_rows, cin), jnp.float32)
        # Per-batch padded slabs (8-aligned zero block on top) built once per conv.
        xps = [jnp.concatenate([zpad, x2[b * L:(b + 1) * L, :]], axis=0)
               for b in range(BB)]                 # each (pad_rows + L, Cin)
        acc = jnp.zeros((rows, cout), jnp.float32)
        for j in range(K):
            s = (K - 1 - j) * d                    # causal shift of tap j
            if s >= L:                             # tap only sees padding -> zero
                continue
            pieces = [xp[pad_rows - s: pad_rows - s + L, :] for xp in xps]
            lhs = pieces[0] if BB == 1 else jnp.concatenate(pieces, axis=0)
            acc = acc + jnp.dot(lhs.astype(jnp.bfloat16), w_ref[j],
                                preferred_element_type=jnp.float32)
        return acc + b_ref[...]                    # bias broadcast (1,Cout)->(rows,Cout)

    idx = 0
    for i, d in enumerate(dilations):
        w1, b1, w2, b2 = wrefs[idx: idx + 4]
        idx += 4
        if has_down[i]:
            wd, bd = wrefs[idx: idx + 2]
            idx += 2
        # conv1 -> chomp -> relu (dropout = identity in eval)
        h = jnp.maximum(causal_conv(act, w1, b1, d), 0.0)
        # conv2 -> chomp -> relu
        h = jnp.maximum(causal_conv(h, w2, b2, d), 0.0)
        # residual path (1x1 conv if channel counts differ) — one batched dot
        if has_down[i]:
            res = jnp.dot(act.astype(jnp.bfloat16), wd[...],
                          preferred_element_type=jnp.float32) + bd[...]
        else:
            res = act
        act = jnp.maximum(h + res, 0.0)            # block output, (BB*L, C_i) f32

    # flatten -> Linear -> Softmax.  The (B,C,L) flatten permutation is folded
    # into dense_wp at init, so logits[b] = sum_t act[b*L+t] @ wp[t] + bias.
    wp_ref, bden_ref = wrefs[idx], wrefs[idx + 1]
    wp = wp_ref[...]                               # (L, C, O) bf16, loaded once
    bden = bden_ref[...]                           # (1, O) f32
    for b in range(BB):
        lg = bden
        for t in range(L):                         # L tiny (1,C)@(C,O) dots
            r = b * L + t
            lg = lg + jnp.dot(act[r:r + 1, :].astype(jnp.bfloat16), wp[t],
                              preferred_element_type=jnp.float32)
        m = jnp.max(lg, axis=1, keepdims=True)
        e = jnp.exp(lg - m)
        ssum = jnp.sum(e, axis=1, keepdims=True)
        probs = e * pl.reciprocal(ssum, approx=True)   # EUP reciprocal
        o_ref[b] = probs.astype(o_ref.dtype)       # (1, O) row store


# ----------------------------------------------------------------------------
# Wrapper
# ----------------------------------------------------------------------------
def _replicated_spec(arr):
    nd = arr.ndim
    return pl.BlockSpec(arr.shape, lambda b, _nd=nd: (0,) * _nd)


def tcn_forward(x_ncl, params, *, kernel_size):
    """x_ncl: (B, n_input, L) — PyTorch NCL convention."""
    B, cin0, L = x_ncl.shape
    # One-time NCL -> (B*L, C) row layout of the tiny network input (only
    # remaining out-of-kernel glue; the output-side flatten permutation is
    # folded into the dense weights at init).
    x_rows = jnp.transpose(x_ncl, (0, 2, 1)).reshape(B * L, cin0)

    blocks = params["blocks"]
    dilations = tuple(2 ** i for i in range(len(blocks)))
    has_down = tuple("wd" in blk for blk in blocks)
    n_cls = params["dense_b"].shape[-1]

    max_shift = (kernel_size - 1) * max(dilations)
    pad_rows = max(8, ((max_shift + 7) // 8) * 8)  # 8-aligned in-register pad block

    # Batch block per grid step: up to 8 batch rows share each MXU dot.
    BB = min(B, 8)
    while B % BB:
        BB -= 1
    nb = B // BB

    flat_args = [x_rows]
    in_specs = [pl.BlockSpec((BB * L, cin0), lambda b: (b, 0))]
    for blk in blocks:
        names = ["w1", "b1", "w2", "b2"] + (["wd", "bd"] if "wd" in blk else [])
        for name in names:
            arr = blk[name]
            flat_args.append(arr)
            in_specs.append(_replicated_spec(arr))   # weights resident across grid
    for name in ("dense_wp", "dense_b"):
        flat_args.append(params[name])
        in_specs.append(_replicated_spec(params[name]))

    kernel = functools.partial(_tcn_kernel, K=kernel_size, dilations=dilations,
                               has_down=has_down, pad_rows=pad_rows, L=L)

    out = pl.pallas_call(
        kernel,
        out_shape=jax.ShapeDtypeStruct((B, 1, n_cls), jnp.float32),
        grid=(nb,),
        in_specs=in_specs,
        out_specs=pl.BlockSpec((BB, 1, n_cls), lambda b: (b, 0, 0)),
        compiler_params=pltpu.CompilerParams(
            dimension_semantics=("parallel",)),      # batch tiles across TCs on v7x
    )(*flat_args)
    return out.reshape(B, n_cls)


# ----------------------------------------------------------------------------
# Parameters
# ----------------------------------------------------------------------------
def init_params(key, n_input, kernel_size, input_length, channels):
    def rnd(k, shape, scale=0.1):
        return scale * jax.random.normal(k, shape, jnp.float32)

    params = {"blocks": []}
    for i, n_out in enumerate(channels):
        n_in = n_input if i == 0 else channels[i - 1]
        key, k1, k2, k3, k4, k5, k6 = jax.random.split(key, 7)
        blk = {
            # conv weights stored bf16 (MXU operands); biases stay f32.
            "w1": rnd(k1, (kernel_size, n_in, n_out)).astype(jnp.bfloat16),
            "b1": rnd(k2, (1, n_out)),
            "w2": rnd(k3, (kernel_size, n_out, n_out)).astype(jnp.bfloat16),
            "b2": rnd(k4, (1, n_out)),
        }
        if n_in != n_out:                          # 1x1 downsampling conv
            blk["wd"] = rnd(k5, (n_in, n_out)).astype(jnp.bfloat16)
            blk["bd"] = rnd(k6, (1, n_out))
        params["blocks"].append(blk)

    key, kd1, kd2 = jax.random.split(key, 3)
    C, L, O = channels[-1], input_length, channels[-1]
    # PyTorch dense.weight acts on flatten of (B, C, L): feature index = c*L + t.
    # Fold the (B,C,L)->(B,L,C) transpose into the weights once:
    #   dense_wp[t, c, o] = W_torch[o, c*L + t]
    w_dense = rnd(kd1, (C * L, O))                 # row index = c*L + t
    params["dense_wp"] = w_dense.reshape(C, L, O).transpose(1, 0, 2).astype(jnp.bfloat16)
    params["dense_b"] = rnd(kd2, (1, O))
    return params


# ----------------------------------------------------------------------------
# Pure-JAX reference (independent jnp.pad-based causal conv, same dtype policy)
# ----------------------------------------------------------------------------
def tcn_reference(x_ncl, params, *, kernel_size):
    K = kernel_size
    act = jnp.transpose(x_ncl, (0, 2, 1)).astype(jnp.float32)   # (B, L, C)

    def conv(z, w, b, d):
        P = (K - 1) * d
        zp = jnp.pad(z, ((0, 0), (P, 0), (0, 0)))
        out = jnp.zeros(z.shape[:2] + (w.shape[-1],), jnp.float32)
        for j in range(K):
            xs = zp[:, j * d: j * d + z.shape[1], :].astype(jnp.bfloat16)
            out = out + jnp.einsum("blc,co->blo", xs, w[j],
                                   preferred_element_type=jnp.float32)
        return out + b.reshape(1, 1, -1)

    for i, blk in enumerate(params["blocks"]):
        d = 2 ** i
        h = jax.nn.relu(conv(act, blk["w1"], blk["b1"], d))
        h = jax.nn.relu(conv(h, blk["w2"], blk["b2"], d))
        if "wd" in blk:
            res = jnp.einsum("blc,co->blo", act.astype(jnp.bfloat16), blk["wd"],
                             preferred_element_type=jnp.float32) + blk["bd"].reshape(1, 1, -1)
        else:
            res = act
        act = jax.nn.relu(h + res)

    logits = jnp.einsum("blc,lco->bo", act.astype(jnp.bfloat16), params["dense_wp"],
                        preferred_element_type=jnp.float32) + params["dense_b"]
    return jax.nn.softmax(logits, axis=1)


# ----------------------------------------------------------------------------
if __name__ == "__main__":
    B = 2
    n_input = 4
    kernel_size = 3
    input_length = 16
    channels = [16, 16, 16, 16]

    key = jax.random.PRNGKey(0)
    key, xk, pk = jax.random.split(key, 3)
    x = jax.random.normal(xk, (B, n_input, input_length), jnp.float32)
    params = init_params(pk, n_input, kernel_size, input_length, channels)

    fwd = jax.jit(functools.partial(tcn_forward, kernel_size=kernel_size))
    out = jax.block_until_ready(fwd(x, params))
    ref = jax.block_until_ready(tcn_reference(x, params, kernel_size=kernel_size))

    out_np = np.asarray(out)
    assert out.shape == (B, channels[-1]), out.shape
    assert np.all(np.isfinite(out_np))
    assert np.allclose(out_np.sum(axis=1), 1.0, atol=1e-2), out_np.sum(axis=1)
    assert np.allclose(out_np, np.asarray(ref), atol=5e-3, rtol=5e-2), (out_np, np.asarray(ref))

    print("KERNEL_OK")
</pallas_src>

<mosaic_0001>
module attributes {stable_mosaic.version = 11 : i64} {
  func.func @_tcn_kernel(%arg0: i32, %arg1: memref<32x4xf32, #tpu.memory_space<vmem>>, %arg2: memref<3x4x16xbf16, #tpu.memory_space<vmem>>, %arg3: memref<1x16xf32, #tpu.memory_space<vmem>>, %arg4: memref<3x16x16xbf16, #tpu.memory_space<vmem>>, %arg5: memref<1x16xf32, #tpu.memory_space<vmem>>, %arg6: memref<4x16xbf16, #tpu.memory_space<vmem>>, %arg7: memref<1x16xf32, #tpu.memory_space<vmem>>, %arg8: memref<3x16x16xbf16, #tpu.memory_space<vmem>>, %arg9: memref<1x16xf32, #tpu.memory_space<vmem>>, %arg10: memref<3x16x16xbf16, #tpu.memory_space<vmem>>, %arg11: memref<1x16xf32, #tpu.memory_space<vmem>>, %arg12: memref<3x16x16xbf16, #tpu.memory_space<vmem>>, %arg13: memref<1x16xf32, #tpu.memory_space<vmem>>, %arg14: memref<3x16x16xbf16, #tpu.memory_space<vmem>>, %arg15: memref<1x16xf32, #tpu.memory_space<vmem>>, %arg16: memref<3x16x16xbf16, #tpu.memory_space<vmem>>, %arg17: memref<1x16xf32, #tpu.memory_space<vmem>>, %arg18: memref<3x16x16xbf16, #tpu.memory_space<vmem>>, %arg19: memref<1x16xf32, #tpu.memory_space<vmem>>, %arg20: memref<16x16x16xbf16, #tpu.memory_space<vmem>>, %arg21: memref<1x16xf32, #tpu.memory_space<vmem>>, %arg22: memref<2x1x16xf32, #tpu.memory_space<vmem>>) attributes {dimension_semantics = [#tpu.dimension_semantics<parallel>], iteration_bounds = array<i64: 1>, scalar_prefetch = 0 : i64, scratch_operands = 0 : i64, tpu.core_type = #tpu.core_type<tc>, window_params = [{transform_indices = @transform_0, window_bounds = array<i64: 32, 4>}, {pipeline_mode = #tpu.pipeline_mode<synchronous>, transform_indices = @transform_1, window_bounds = array<i64: 3, 4, 16>}, {pipeline_mode = #tpu.pipeline_mode<synchronous>, transform_indices = @transform_2, window_bounds = array<i64: 1, 16>}, {pipeline_mode = #tpu.pipeline_mode<synchronous>, transform_indices = @transform_3, window_bounds = array<i64: 3, 16, 16>}, {pipeline_mode = #tpu.pipeline_mode<synchronous>, transform_indices = @transform_4, window_bounds = array<i64: 1, 16>}, {pipeline_mode = #tpu.pipeline_mode<synchronous>, transform_indices = @transform_5, window_bounds = array<i64: 4, 16>}, {pipeline_mode = #tpu.pipeline_mode<synchronous>, transform_indices = @transform_6, window_bounds = array<i64: 1, 16>}, {pipeline_mode = #tpu.pipeline_mode<synchronous>, transform_indices = @transform_7, window_bounds = array<i64: 3, 16, 16>}, {pipeline_mode = #tpu.pipeline_mode<synchronous>, transform_indices = @transform_8, window_bounds = array<i64: 1, 16>}, {pipeline_mode = #tpu.pipeline_mode<synchronous>, transform_indices = @transform_9, window_bounds = array<i64: 3, 16, 16>}, {pipeline_mode = #tpu.pipeline_mode<synchronous>, transform_indices = @transform_10, window_bounds = array<i64: 1, 16>}, {pipeline_mode = #tpu.pipeline_mode<synchronous>, transform_indices = @transform_11, window_bounds = array<i64: 3, 16, 16>}, {pipeline_mode = #tpu.pipeline_mode<synchronous>, transform_indices = @transform_12, window_bounds = array<i64: 1, 16>}, {pipeline_mode = #tpu.pipeline_mode<synchronous>, transform_indices = @transform_13, window_bounds = array<i64: 3, 16, 16>}, {pipeline_mode = #tpu.pipeline_mode<synchronous>, transform_indices = @transform_14, window_bounds = array<i64: 1, 16>}, {pipeline_mode = #tpu.pipeline_mode<synchronous>, transform_indices = @transform_15, window_bounds = array<i64: 3, 16, 16>}, {pipeline_mode = #tpu.pipeline_mode<synchronous>, transform_indices = @transform_16, window_bounds = array<i64: 1, 16>}, {pipeline_mode = #tpu.pipeline_mode<synchronous>, transform_indices = @transform_17, window_bounds = array<i64: 3, 16, 16>}, {pipeline_mode = #tpu.pipeline_mode<synchronous>, transform_indices = @transform_18, window_bounds = array<i64: 1, 16>}, {pipeline_mode = #tpu.pipeline_mode<synchronous>, transform_indices = @transform_19, window_bounds = array<i64: 16, 16, 16>}, {pipeline_mode = #tpu.pipeline_mode<synchronous>, transform_indices = @transform_20, window_bounds = array<i64: 1, 16>}, {transform_indices = @transform_21, window_bounds = array<i64: 2, 1, 16>}]} {
    %c0 = arith.constant 0 : index
    %c0_0 = arith.constant 0 : index
    %0 = vector.load %arg1[%c0, %c0_0] : memref<32x4xf32, #tpu.memory_space<vmem>>, vector<32x4xf32>
    %cst = arith.constant 0.000000e+00 : f32
    %1 = vector.broadcast %cst : f32 to vector<16x4xf32>
    %2 = vector.extract_strided_slice %0 {offsets = [0, 0], sizes = [16, 4], strides = [1, 1]} : vector<32x4xf32> to vector<16x4xf32>
    %3 = tpu.concatenate %1, %2 in 0 : vector<16x4xf32>, vector<16x4xf32> -> vector<32x4xf32>
    %4 = vector.extract_strided_slice %0 {offsets = [16, 0], sizes = [16, 4], strides = [1, 1]} : vector<32x4xf32> to vector<16x4xf32>
    %5 = tpu.concatenate %1, %4 in 0 : vector<16x4xf32>, vector<16x4xf32> -> vector<32x4xf32>
    %cst_1 = arith.constant 0.000000e+00 : f32
    %6 = vector.broadcast %cst_1 : f32 to vector<32x16xf32>
    %7 = vector.extract_strided_slice %3 {offsets = [14, 0], sizes = [16, 4], strides = [1, 1]} : vector<32x4xf32> to vector<16x4xf32>
    %8 = vector.extract_strided_slice %5 {offsets = [14, 0], sizes = [16, 4], strides = [1, 1]} : vector<32x4xf32> to vector<16x4xf32>
    %9 = tpu.concatenate %7, %8 in 0 : vector<16x4xf32>, vector<16x4xf32> -> vector<32x4xf32>
    %10 = arith.truncf %9 : vector<32x4xf32> to vector<32x4xbf16>
    %c0_2 = arith.constant 0 : index
    %c0_3 = arith.constant 0 : index
    %c0_4 = arith.constant 0 : index
    %11 = vector.load %arg2[%c0_2, %c0_3, %c0_4] : memref<3x4x16xbf16, #tpu.memory_space<vmem>>, vector<1x4x16xbf16>
    %12 = vector.shape_cast %11 : vector<1x4x16xbf16> to vector<4x16xbf16>
    %cst_5 = arith.constant dense<0.000000e+00> : vector<32x16xf32>
    %13 = tpu.matmul %10, %12, %cst_5 {dimension_numbers = #tpu.dot_dimension_numbers<[1], [0], [0], [1], [0, 0, 1, 1], [], []>} : vector<32x4xbf16>, vector<4x16xbf16>, vector<32x16xf32> -> vector<32x16xf32>
    %14 = arith.addf %6, %13 : vector<32x16xf32>
    %15 = vector.extract_strided_slice %3 {offsets = [15, 0], sizes = [16, 4], strides = [1, 1]} : vector<32x4xf32> to vector<16x4xf32>
    %16 = vector.extract_strided_slice %5 {offsets = [15, 0], sizes = [16, 4], strides = [1, 1]} : vector<32x4xf32> to vector<16x4xf32>
    %17 = tpu.concatenate %15, %16 in 0 : vector<16x4xf32>, vector<16x4xf32> -> vector<32x4xf32>
    %18 = arith.truncf %17 : vector<32x4xf32> to vector<32x4xbf16>
    %c1 = arith.constant 1 : index
    %c0_6 = arith.constant 0 : index
    %c0_7 = arith.constant 0 : index
    %19 = vector.load %arg2[%c1, %c0_6, %c0_7] : memref<3x4x16xbf16, #tpu.memory_space<vmem>>, vector<1x4x16xbf16>
    %20 = vector.shape_cast %19 : vector<1x4x16xbf16> to vector<4x16xbf16>
    %cst_8 = arith.constant dense<0.000000e+00> : vector<32x16xf32>
    %21 = tpu.matmul %18, %20, %cst_8 {dimension_numbers = #tpu.dot_dimension_numbers<[1], [0], [0], [1], [0, 0, 1, 1], [], []>} : vector<32x4xbf16>, vector<4x16xbf16>, vector<32x16xf32> -> vector<32x16xf32>
    %22 = arith.addf %14, %21 : vector<32x16xf32>
    %23 = vector.extract_strided_slice %3 {offsets = [16, 0], sizes = [16, 4], strides = [1, 1]} : vector<32x4xf32> to vector<16x4xf32>
    %24 = vector.extract_strided_slice %5 {offsets = [16, 0], sizes = [16, 4], strides = [1, 1]} : vector<32x4xf32> to vector<16x4xf32>
    %25 = tpu.concatenate %23, %24 in 0 : vector<16x4xf32>, vector<16x4xf32> -> vector<32x4xf32>
    %26 = arith.truncf %25 : vector<32x4xf32> to vector<32x4xbf16>
    %c2 = arith.constant 2 : index
    %c0_9 = arith.constant 0 : index
    %c0_10 = arith.constant 0 : index
    %27 = vector.load %arg2[%c2, %c0_9, %c0_10] : memref<3x4x16xbf16, #tpu.memory_space<vmem>>, vector<1x4x16xbf16>
    %28 = vector.shape_cast %27 : vector<1x4x16xbf16> to vector<4x16xbf16>
    %cst_11 = arith.constant dense<0.000000e+00> : vector<32x16xf32>
    %29 = tpu.matmul %26, %28, %cst_11 {dimension_numbers = #tpu.dot_dimension_numbers<[1], [0], [0], [1], [0, 0, 1, 1], [], []>} : vector<32x4xbf16>, vector<4x16xbf16>, vector<32x16xf32> -> vector<32x16xf32>
    %30 = arith.addf %22, %29 : vector<32x16xf32>
    %c0_12 = arith.constant 0 : index
    %c0_13 = arith.constant 0 : index
    %31 = vector.load %arg3[%c0_12, %c0_13] : memref<1x16xf32, #tpu.memory_space<vmem>>, vector<1x16xf32>
    %32 = vector.broadcast %31 : vector<1x16xf32> to vector<32x16xf32>
    %33 = arith.addf %30, %32 : vector<32x16xf32>
    %cst_14 = arith.constant 0.000000e+00 : f32
    %34 = vector.broadcast %cst_14 : f32 to vector<32x16xf32>
    %35 = arith.maximumf %33, %34 : vector<32x16xf32>
    %cst_15 = arith.constant 0.000000e+00 : f32
    %36 = vector.broadcast %cst_15 : f32 to vector<16x16xf32>
    %37 = vector.extract_strided_slice %35 {offsets = [0, 0], sizes = [16, 16], strides = [1, 1]} : vector<32x16xf32> to vector<16x16xf32>
    %38 = tpu.concatenate %36, %37 in 0 : vector<16x16xf32>, vector<16x16xf32> -> vector<32x16xf32>
    %39 = vector.extract_strided_slice %35 {offsets = [16, 0], sizes = [16, 16], strides = [1, 1]} : vector<32x16xf32> to vector<16x16xf32>
    %40 = tpu.concatenate %36, %39 in 0 : vector<16x16xf32>, vector<16x16xf32> -> vector<32x16xf32>
    %cst_16 = arith.constant 0.000000e+00 : f32
    %41 = vector.broadcast %cst_16 : f32 to vector<32x16xf32>
    %42 = vector.extract_strided_slice %38 {offsets = [14, 0], sizes = [16, 16], strides = [1, 1]} : vector<32x16xf32> to vector<16x16xf32>
    %43 = vector.extract_strided_slice %40 {offsets = [14, 0], sizes = [16, 16], strides = [1, 1]} : vector<32x16xf32> to vector<16x16xf32>
    %44 = tpu.concatenate %42, %43 in 0 : vector<16x16xf32>, vector<16x16xf32> -> vector<32x16xf32>
    %45 = arith.truncf %44 : vector<32x16xf32> to vector<32x16xbf16>
    %c0_17 = arith.constant 0 : index
    %c0_18 = arith.constant 0 : index
    %c0_19 = arith.constant 0 : index
    %46 = vector.load %arg4[%c0_17, %c0_18, %c0_19] : memref<3x16x16xbf16, #tpu.memory_space<vmem>>, vector<1x16x16xbf16>
    %47 = vector.shape_cast %46 : vector<1x16x16xbf16> to vector<16x16xbf16>
    %cst_20 = arith.constant dense<0.000000e+00> : vector<32x16xf32>
    %48 = tpu.matmul %45, %47, %cst_20 {dimension_numbers = #tpu.dot_dimension_numbers<[1], [0], [0], [1], [0, 0, 1, 1], [], []>} : vector<32x16xbf16>, vector<16x16xbf16>, vector<32x16xf32> -> vector<32x16xf32>
    %49 = arith.addf %41, %48 : vector<32x16xf32>
    %50 = vector.extract_strided_slice %38 {offsets = [15, 0], sizes = [16, 16], strides = [1, 1]} : vector<32x16xf32> to vector<16x16xf32>
    %51 = vector.extract_strided_slice %40 {offsets = [15, 0], sizes = [16, 16], strides = [1, 1]} : vector<32x16xf32> to vector<16x16xf32>
    %52 = tpu.concatenate %50, %51 in 0 : vector<16x16xf32>, vector<16x16xf32> -> vector<32x16xf32>
    %53 = arith.truncf %52 : vector<32x16xf32> to vector<32x16xbf16>
    %c1_21 = arith.constant 1 : index
    %c0_22 = arith.constant 0 : index
    %c0_23 = arith.constant 0 : index
    %54 = vector.load %arg4[%c1_21, %c0_22, %c0_23] : memref<3x16x16xbf16, #tpu.memory_space<vmem>>, vector<1x16x16xbf16>
    %55 = vector.shape_cast %54 : vector<1x16x16xbf16> to vector<16x16xbf16>
    %cst_24 = arith.constant dense<0.000000e+00> : vector<32x16xf32>
    %56 = tpu.matmul %53, %55, %cst_24 {dimension_numbers = #tpu.dot_dimension_numbers<[1], [0], [0], [1], [0, 0, 1, 1], [], []>} : vector<32x16xbf16>, vector<16x16xbf16>, vector<32x16xf32> -> vector<32x16xf32>
    %57 = arith.addf %49, %56 : vector<32x16xf32>
    %58 = vector.extract_strided_slice %38 {offsets = [16, 0], sizes = [16, 16], strides = [1, 1]} : vector<32x16xf32> to vector<16x16xf32>
    %59 = vector.extract_strided_slice %40 {offsets = [16, 0], sizes = [16, 16], strides = [1, 1]} : vector<32x16xf32> to vector<16x16xf32>
    %60 = tpu.concatenate %58, %59 in 0 : vector<16x16xf32>, vector<16x16xf32> -> vector<32x16xf32>
    %61 = arith.truncf %60 : vector<32x16xf32> to vector<32x16xbf16>
    %c2_25 = arith.constant 2 : index
    %c0_26 = arith.constant 0 : index
    %c0_27 = arith.constant 0 : index
    %62 = vector.load %arg4[%c2_25, %c0_26, %c0_27] : memref<3x16x16xbf16, #tpu.memory_space<vmem>>, vector<1x16x16xbf16>
    %63 = vector.shape_cast %62 : vector<1x16x16xbf16> to vector<16x16xbf16>
    %cst_28 = arith.constant dense<0.000000e+00> : vector<32x16xf32>
    %64 = tpu.matmul %61, %63, %cst_28 {dimension_numbers = #tpu.dot_dimension_numbers<[1], [0], [0], [1], [0, 0, 1, 1], [], []>} : vector<32x16xbf16>, vector<16x16xbf16>, vector<32x16xf32> -> vector<32x16xf32>
    %65 = arith.addf %57, %64 : vector<32x16xf32>
    %c0_29 = arith.constant 0 : index
    %c0_30 = arith.constant 0 : index
    %66 = vector.load %arg5[%c0_29, %c0_30] : memref<1x16xf32, #tpu.memory_space<vmem>>, vector<1x16xf32>
    %67 = vector.broadcast %66 : vector<1x16xf32> to vector<32x16xf32>
    %68 = arith.addf %65, %67 : vector<32x16xf32>
    %cst_31 = arith.constant 0.000000e+00 : f32
    %69 = vector.broadcast %cst_31 : f32 to vector<32x16xf32>
    %70 = arith.maximumf %68, %69 : vector<32x16xf32>
    %71 = arith.truncf %0 : vector<32x4xf32> to vector<32x4xbf16>
    %c0_32 = arith.constant 0 : index
    %c0_33 = arith.constant 0 : index
    %72 = vector.load %arg6[%c0_32, %c0_33] : memref<4x16xbf16, #tpu.memory_space<vmem>>, vector<4x16xbf16>
    %cst_34 = arith.constant dense<0.000000e+00> : vector<32x16xf32>
    %73 = tpu.matmul %71, %72, %cst_34 {dimension_numbers = #tpu.dot_dimension_numbers<[1], [0], [0], [1], [0, 0, 1, 1], [], []>} : vector<32x4xbf16>, vector<4x16xbf16>, vector<32x16xf32> -> vector<32x16xf32>
    %c0_35 = arith.constant 0 : index
    %c0_36 = arith.constant 0 : index
    %74 = vector.load %arg7[%c0_35, %c0_36] : memref<1x16xf32, #tpu.memory_space<vmem>>, vector<1x16xf32>
    %75 = vector.broadcast %74 : vector<1x16xf32> to vector<32x16xf32>
    %76 = arith.addf %73, %75 : vector<32x16xf32>
    %77 = arith.addf %70, %76 : vector<32x16xf32>
    %cst_37 = arith.constant 0.000000e+00 : f32
    %78 = vector.broadcast %cst_37 : f32 to vector<32x16xf32>
    %79 = arith.maximumf %77, %78 : vector<32x16xf32>
    %cst_38 = arith.constant 0.000000e+00 : f32
    %80 = vector.broadcast %cst_38 : f32 to vector<16x16xf32>
    %81 = vector.extract_strided_slice %79 {offsets = [0, 0], sizes = [16, 16], strides = [1, 1]} : vector<32x16xf32> to vector<16x16xf32>
    %82 = tpu.concatenate %80, %81 in 0 : vector<16x16xf32>, vector<16x16xf32> -> vector<32x16xf32>
    %83 = vector.extract_strided_slice %79 {offsets = [16, 0], sizes = [16, 16], strides = [1, 1]} : vector<32x16xf32> to vector<16x16xf32>
    %84 = tpu.concatenate %80, %83 in 0 : vector<16x16xf32>, vector<16x16xf32> -> vector<32x16xf32>
    %cst_39 = arith.constant 0.000000e+00 : f32
    %85 = vector.broadcast %cst_39 : f32 to vector<32x16xf32>
    %86 = vector.extract_strided_slice %82 {offsets = [12, 0], sizes = [16, 16], strides = [1, 1]} : vector<32x16xf32> to vector<16x16xf32>
    %87 = vector.extract_strided_slice %84 {offsets = [12, 0], sizes = [16, 16], strides = [1, 1]} : vector<32x16xf32> to vector<16x16xf32>
    %88 = tpu.concatenate %86, %87 in 0 : vector<16x16xf32>, vector<16x16xf32> -> vector<32x16xf32>
    %89 = arith.truncf %88 : vector<32x16xf32> to vector<32x16xbf16>
    %c0_40 = arith.constant 0 : index
    %c0_41 = arith.constant 0 : index
    %c0_42 = arith.constant 0 : index
    %90 = vector.load %arg8[%c0_40, %c0_41, %c0_42] : memref<3x16x16xbf16, #tpu.memory_space<vmem>>, vector<1x16x16xbf16>
    %91 = vector.shape_cast %90 : vector<1x16x16xbf16> to vector<16x16xbf16>
    %cst_43 = arith.constant dense<0.000000e+00> : vector<32x16xf32>
    %92 = tpu.matmul %89, %91, %cst_43 {dimension_numbers = #tpu.dot_dimension_numbers<[1], [0], [0], [1], [0, 0, 1, 1], [], []>} : vector<32x16xbf16>, vector<16x16xbf16>, vector<32x16xf32> -> vector<32x16xf32>
    %93 = arith.addf %85, %92 : vector<32x16xf32>
    %94 = vector.extract_strided_slice %82 {offsets = [14, 0], sizes = [16, 16], strides = [1, 1]} : vector<32x16xf32> to vector<16x16xf32>
    %95 = vector.extract_strided_slice %84 {offsets = [14, 0], sizes = [16, 16], strides = [1, 1]} : vector<32x16xf32> to vector<16x16xf32>
    %96 = tpu.concatenate %94, %95 in 0 : vector<16x16xf32>, vector<16x16xf32> -> vector<32x16xf32>
    %97 = arith.truncf %96 : vector<32x16xf32> to vector<32x16xbf16>
    %c1_44 = arith.constant 1 : index
    %c0_45 = arith.constant 0 : index
    %c0_46 = arith.constant 0 : index
    %98 = vector.load %arg8[%c1_44, %c0_45, %c0_46] : memref<3x16x16xbf16, #tpu.memory_space<vmem>>, vector<1x16x16xbf16>
    %99 = vector.shape_cast %98 : vector<1x16x16xbf16> to vector<16x16xbf16>
    %cst_47 = arith.constant dense<0.000000e+00> : vector<32x16xf32>
    %100 = tpu.matmul %97, %99, %cst_47 {dimension_numbers = #tpu.dot_dimension_numbers<[1], [0], [0], [1], [0, 0, 1, 1], [], []>} : vector<32x16xbf16>, vector<16x16xbf16>, vector<32x16xf32> -> vector<32x16xf32>
    %101 = arith.addf %93, %100 : vector<32x16xf32>
    %102 = vector.extract_strided_slice %82 {offsets = [16, 0], sizes = [16, 16], strides = [1, 1]} : vector<32x16xf32> to vector<16x16xf32>
    %103 = vector.extract_strided_slice %84 {offsets = [16, 0], sizes = [16, 16], strides = [1, 1]} : vector<32x16xf32> to vector<16x16xf32>
    %104 = tpu.concatenate %102, %103 in 0 : vector<16x16xf32>, vector<16x16xf32> -> vector<32x16xf32>
    %105 = arith.truncf %104 : vector<32x16xf32> to vector<32x16xbf16>
    %c2_48 = arith.constant 2 : index
    %c0_49 = arith.constant 0 : index
    %c0_50 = arith.constant 0 : index
    %106 = vector.load %arg8[%c2_48, %c0_49, %c0_50] : memref<3x16x16xbf16, #tpu.memory_space<vmem>>, vector<1x16x16xbf16>
    %107 = vector.shape_cast %106 : vector<1x16x16xbf16> to vector<16x16xbf16>
    %cst_51 = arith.constant dense<0.000000e+00> : vector<32x16xf32>
    %108 = tpu.matmul %105, %107, %cst_51 {dimension_numbers = #tpu.dot_dimension_numbers<[1], [0], [0], [1], [0, 0, 1, 1], [], []>} : vector<32x16xbf16>, vector<16x16xbf16>, vector<32x16xf32> -> vector<32x16xf32>
    %109 = arith.addf %101, %108 : vector<32x16xf32>
    %c0_52 = arith.constant 0 : index
    %c0_53 = arith.constant 0 : index
    %110 = vector.load %arg9[%c0_52, %c0_53] : memref<1x16xf32, #tpu.memory_space<vmem>>, vector<1x16xf32>
    %111 = vector.broadcast %110 : vector<1x16xf32> to vector<32x16xf32>
    %112 = arith.addf %109, %111 : vector<32x16xf32>
    %cst_54 = arith.constant 0.000000e+00 : f32
    %113 = vector.broadcast %cst_54 : f32 to vector<32x16xf32>
    %114 = arith.maximumf %112, %113 : vector<32x16xf32>
    %cst_55 = arith.constant 0.000000e+00 : f32
    %115 = vector.broadcast %cst_55 : f32 to vector<16x16xf32>
    %116 = vector.extract_strided_slice %114 {offsets = [0, 0], sizes = [16, 16], strides = [1, 1]} : vector<32x16xf32> to vector<16x16xf32>
    %117 = tpu.concatenate %115, %116 in 0 : vector<16x16xf32>, vector<16x16xf32> -> vector<32x16xf32>
    %118 = vector.extract_strided_slice %114 {offsets = [16, 0], sizes = [16, 16], strides = [1, 1]} : vector<32x16xf32> to vector<16x16xf32>
    %119 = tpu.concatenate %115, %118 in 0 : vector<16x16xf32>, vector<16x16xf32> -> vector<32x16xf32>
    %cst_56 = arith.constant 0.000000e+00 : f32
    %120 = vector.broadcast %cst_56 : f32 to vector<32x16xf32>
    %121 = vector.extract_strided_slice %117 {offsets = [12, 0], sizes = [16, 16], strides = [1, 1]} : vector<32x16xf32> to vector<16x16xf32>
    %122 = vector.extract_strided_slice %119 {offsets = [12, 0], sizes = [16, 16], strides = [1, 1]} : vector<32x16xf32> to vector<16x16xf32>
    %123 = tpu.concatenate %121, %122 in 0 : vector<16x16xf32>, vector<16x16xf32> -> vector<32x16xf32>
    %124 = arith.truncf %123 : vector<32x16xf32> to vector<32x16xbf16>
    %c0_57 = arith.constant 0 : index
    %c0_58 = arith.constant 0 : index
    %c0_59 = arith.constant 0 : index
    %125 = vector.load %arg10[%c0_57, %c0_58, %c0_59] : memref<3x16x16xbf16, #tpu.memory_space<vmem>>, vector<1x16x16xbf16>
    %126 = vector.shape_cast %125 : vector<1x16x16xbf16> to vector<16x16xbf16>
    %cst_60 = arith.constant dense<0.000000e+00> : vector<32x16xf32>
    %127 = tpu.matmul %124, %126, %cst_60 {dimension_numbers = #tpu.dot_dimension_numbers<[1], [0], [0], [1], [0, 0, 1, 1], [], []>} : vector<32x16xbf16>, vector<16x16xbf16>, vector<32x16xf32> -> vector<32x16xf32>
    %128 = arith.addf %120, %127 : vector<32x16xf32>
    %129 = vector.extract_strided_slice %117 {offsets = [14, 0], sizes = [16, 16], strides = [1, 1]} : vector<32x16xf32> to vector<16x16xf32>
    %130 = vector.extract_strided_slice %119 {offsets = [14, 0], sizes = [16, 16], strides = [1, 1]} : vector<32x16xf32> to vector<16x16xf32>
    %131 = tpu.concatenate %129, %130 in 0 : vector<16x16xf32>, vector<16x16xf32> -> vector<32x16xf32>
    %132 = arith.truncf %131 : vector<32x16xf32> to vector<32x16xbf16>
    %c1_61 = arith.constant 1 : index
    %c0_62 = arith.constant 0 : index
    %c0_63 = arith.constant 0 : index
    %133 = vector.load %arg10[%c1_61, %c0_62, %c0_63] : memref<3x16x16xbf16, #tpu.memory_space<vmem>>, vector<1x16x16xbf16>
    %134 = vector.shape_cast %133 : vector<1x16x16xbf16> to vector<16x16xbf16>
    %cst_64 = arith.constant dense<0.000000e+00> : vector<32x16xf32>
    %135 = tpu.matmul %132, %134, %cst_64 {dimension_numbers = #tpu.dot_dimension_numbers<[1], [0], [0], [1], [0, 0, 1, 1], [], []>} : vector<32x16xbf16>, vector<16x16xbf16>, vector<32x16xf32> -> vector<32x16xf32>
    %136 = arith.addf %128, %135 : vector<32x16xf32>
    %137 = vector.extract_strided_slice %117 {offsets = [16, 0], sizes = [16, 16], strides = [1, 1]} : vector<32x16xf32> to vector<16x16xf32>
    %138 = vector.extract_strided_slice %119 {offsets = [16, 0], sizes = [16, 16], strides = [1, 1]} : vector<32x16xf32> to vector<16x16xf32>
    %139 = tpu.concatenate %137, %138 in 0 : vector<16x16xf32>, vector<16x16xf32> -> vector<32x16xf32>
    %140 = arith.truncf %139 : vector<32x16xf32> to vector<32x16xbf16>
    %c2_65 = arith.constant 2 : index
    %c0_66 = arith.constant 0 : index
    %c0_67 = arith.constant 0 : index
    %141 = vector.load %arg10[%c2_65, %c0_66, %c0_67] : memref<3x16x16xbf16, #tpu.memory_space<vmem>>, vector<1x16x16xbf16>
    %142 = vector.shape_cast %141 : vector<1x16x16xbf16> to vector<16x16xbf16>
    %cst_68 = arith.constant dense<0.000000e+00> : vector<32x16xf32>
    %143 = tpu.matmul %140, %142, %cst_68 {dimension_numbers = #tpu.dot_dimension_numbers<[1], [0], [0], [1], [0, 0, 1, 1], [], []>} : vector<32x16xbf16>, vector<16x16xbf16>, vector<32x16xf32> -> vector<32x16xf32>
    %144 = arith.addf %136, %143 : vector<32x16xf32>
    %c0_69 = arith.constant 0 : index
    %c0_70 = arith.constant 0 : index
    %145 = vector.load %arg11[%c0_69, %c0_70] : memref<1x16xf32, #tpu.memory_space<vmem>>, vector<1x16xf32>
    %146 = vector.broadcast %145 : vector<1x16xf32> to vector<32x16xf32>
    %147 = arith.addf %144, %146 : vector<32x16xf32>
    %cst_71 = arith.constant 0.000000e+00 : f32
    %148 = vector.broadcast %cst_71 : f32 to vector<32x16xf32>
    %149 = arith.maximumf %147, %148 : vector<32x16xf32>
    %150 = arith.addf %149, %79 : vector<32x16xf32>
    %cst_72 = arith.constant 0.000000e+00 : f32
    %151 = vector.broadcast %cst_72 : f32 to vector<32x16xf32>
    %152 = arith.maximumf %150, %151 : vector<32x16xf32>
    %cst_73 = arith.constant 0.000000e+00 : f32
    %153 = vector.broadcast %cst_73 : f32 to vector<16x16xf32>
    %154 = vector.extract_strided_slice %152 {offsets = [0, 0], sizes = [16, 16], strides = [1, 1]} : vector<32x16xf32> to vector<16x16xf32>
    %155 = tpu.concatenate %153, %154 in 0 : vector<16x16xf32>, vector<16x16xf32> -> vector<32x16xf32>
    %156 = vector.extract_strided_slice %152 {offsets = [16, 0], sizes = [16, 16], strides = [1, 1]} : vector<32x16xf32> to vector<16x16xf32>
    %157 = tpu.concatenate %153, %156 in 0 : vector<16x16xf32>, vector<16x16xf32> -> vector<32x16xf32>
    %cst_74 = arith.constant 0.000000e+00 : f32
    %158 = vector.broadcast %cst_74 : f32 to vector<32x16xf32>
    %159 = vector.extract_strided_slice %155 {offsets = [8, 0], sizes = [16, 16], strides = [1, 1]} : vector<32x16xf32> to vector<16x16xf32>
    %160 = vector.extract_strided_slice %157 {offsets = [8, 0], sizes = [16, 16], strides = [1, 1]} : vector<32x16xf32> to vector<16x16xf32>
    %161 = tpu.concatenate %159, %160 in 0 : vector<16x16xf32>, vector<16x16xf32> -> vector<32x16xf32>
    %162 = arith.truncf %161 : vector<32x16xf32> to vector<32x16xbf16>
    %c0_75 = arith.constant 0 : index
    %c0_76 = arith.constant 0 : index
    %c0_77 = arith.constant 0 : index
    %163 = vector.load %arg12[%c0_75, %c0_76, %c0_77] : memref<3x16x16xbf16, #tpu.memory_space<vmem>>, vector<1x16x16xbf16>
    %164 = vector.shape_cast %163 : vector<1x16x16xbf16> to vector<16x16xbf16>
    %cst_78 = arith.constant dense<0.000000e+00> : vector<32x16xf32>
    %165 = tpu.matmul %162, %164, %cst_78 {dimension_numbers = #tpu.dot_dimension_numbers<[1], [0], [0], [1], [0, 0, 1, 1], [], []>} : vector<32x16xbf16>, vector<16x16xbf16>, vector<32x16xf32> -> vector<32x16xf32>
    %166 = arith.addf %158, %165 : vector<32x16xf32>
    %167 = vector.extract_strided_slice %155 {offsets = [12, 0], sizes = [16, 16], strides = [1, 1]} : vector<32x16xf32> to vector<16x16xf32>
    %168 = vector.extract_strided_slice %157 {offsets = [12, 0], sizes = [16, 16], strides = [1, 1]} : vector<32x16xf32> to vector<16x16xf32>
    %169 = tpu.concatenate %167, %168 in 0 : vector<16x16xf32>, vector<16x16xf32> -> vector<32x16xf32>
    %170 = arith.truncf %169 : vector<32x16xf32> to vector<32x16xbf16>
    %c1_79 = arith.constant 1 : index
    %c0_80 = arith.constant 0 : index
    %c0_81 = arith.constant 0 : index
    %171 = vector.load %arg12[%c1_79, %c0_80, %c0_81] : memref<3x16x16xbf16, #tpu.memory_space<vmem>>, vector<1x16x16xbf16>
    %172 = vector.shape_cast %171 : vector<1x16x16xbf16> to vector<16x16xbf16>
    %cst_82 = arith.constant dense<0.000000e+00> : vector<32x16xf32>
    %173 = tpu.matmul %170, %172, %cst_82 {dimension_numbers = #tpu.dot_dimension_numbers<[1], [0], [0], [1], [0, 0, 1, 1], [], []>} : vector<32x16xbf16>, vector<16x16xbf16>, vector<32x16xf32> -> vector<32x16xf32>
    %174 = arith.addf %166, %173 : vector<32x16xf32>
    %175 = vector.extract_strided_slice %155 {offsets = [16, 0], sizes = [16, 16], strides = [1, 1]} : vector<32x16xf32> to vector<16x16xf32>
    %176 = vector.extract_strided_slice %157 {offsets = [16, 0], sizes = [16, 16], strides = [1, 1]} : vector<32x16xf32> to vector<16x16xf32>
    %177 = tpu.concatenate %175, %176 in 0 : vector<16x16xf32>, vector<16x16xf32> -> vector<32x16xf32>
    %178 = arith.truncf %177 : vector<32x16xf32> to vector<32x16xbf16>
    %c2_83 = arith.constant 2 : index
    %c0_84 = arith.constant 0 : index
    %c0_85 = arith.constant 0 : index
    %179 = vector.load %arg12[%c2_83, %c0_84, %c0_85] : memref<3x16x16xbf16, #tpu.memory_space<vmem>>, vector<1x16x16xbf16>
    %180 = vector.shape_cast %179 : vector<1x16x16xbf16> to vector<16x16xbf16>
    %cst_86 = arith.constant dense<0.000000e+00> : vector<32x16xf32>
    %181 = tpu.matmul %178, %180, %cst_86 {dimension_numbers = #tpu.dot_dimension_numbers<[1], [0], [0], [1], [0, 0, 1, 1], [], []>} : vector<32x16xbf16>, vector<16x16xbf16>, vector<32x16xf32> -> vector<32x16xf32>
    %182 = arith.addf %174, %181 : vector<32x16xf32>
    %c0_87 = arith.constant 0 : index
    %c0_88 = arith.constant 0 : index
    %183 = vector.load %arg13[%c0_87, %c0_88] : memref<1x16xf32, #tpu.memory_space<vmem>>, vector<1x16xf32>
    %184 = vector.broadcast %183 : vector<1x16xf32> to vector<32x16xf32>
    %185 = arith.addf %182, %184 : vector<32x16xf32>
    %cst_89 = arith.constant 0.000000e+00 : f32
    %186 = vector.broadcast %cst_89 : f32 to vector<32x16xf32>
    %187 = arith.maximumf %185, %186 : vector<32x16xf32>
    %cst_90 = arith.constant 0.000000e+00 : f32
    %188 = vector.broadcast %cst_90 : f32 to vector<16x16xf32>
    %189 = vector.extract_strided_slice %187 {offsets = [0, 0], sizes = [16, 16], strides = [1, 1]} : vector<32x16xf32> to vector<16x16xf32>
    %190 = tpu.concatenate %188, %189 in 0 : vector<16x16xf32>, vector<16x16xf32> -> vector<32x16xf32>
    %191 = vector.extract_strided_slice %187 {offsets = [16, 0], sizes = [16, 16], strides = [1, 1]} : vector<32x16xf32> to vector<16x16xf32>
    %192 = tpu.concatenate %188, %191 in 0 : vector<16x16xf32>, vector<16x16xf32> -> vector<32x16xf32>
    %cst_91 = arith.constant 0.000000e+00 : f32
    %193 = vector.broadcast %cst_91 : f32 to vector<32x16xf32>
    %194 = vector.extract_strided_slice %190 {offsets = [8, 0], sizes = [16, 16], strides = [1, 1]} : vector<32x16xf32> to vector<16x16xf32>
    %195 = vector.extract_strided_slice %192 {offsets = [8, 0], sizes = [16, 16], strides = [1, 1]} : vector<32x16xf32> to vector<16x16xf32>
    %196 = tpu.concatenate %194, %195 in 0 : vector<16x16xf32>, vector<16x16xf32> -> vector<32x16xf32>
    %197 = arith.truncf %196 : vector<32x16xf32> to vector<32x16xbf16>
    %c0_92 = arith.constant 0 : index
    %c0_93 = arith.constant 0 : index
    %c0_94 = arith.constant 0 : index
    %198 = vector.load %arg14[%c0_92, %c0_93, %c0_94] : memref<3x16x16xbf16, #tpu.memory_space<vmem>>, vector<1x16x16xbf16>
    %199 = vector.shape_cast %198 : vector<1x16x16xbf16> to vector<16x16xbf16>
    %cst_95 = arith.constant dense<0.000000e+00> : vector<32x16xf32>
    %200 = tpu.matmul %197, %199, %cst_95 {dimension_numbers = #tpu.dot_dimension_numbers<[1], [0], [0], [1], [0, 0, 1, 1], [], []>} : vector<32x16xbf16>, vector<16x16xbf16>, vector<32x16xf32> -> vector<32x16xf32>
    %201 = arith.addf %193, %200 : vector<32x16xf32>
    %202 = vector.extract_strided_slice %190 {offsets = [12, 0], sizes = [16, 16], strides = [1, 1]} : vector<32x16xf32> to vector<16x16xf32>
    %203 = vector.extract_strided_slice %192 {offsets = [12, 0], sizes = [16, 16], strides = [1, 1]} : vector<32x16xf32> to vector<16x16xf32>
    %204 = tpu.concatenate %202, %203 in 0 : vector<16x16xf32>, vector<16x16xf32> -> vector<32x16xf32>
    %205 = arith.truncf %204 : vector<32x16xf32> to vector<32x16xbf16>
    %c1_96 = arith.constant 1 : index
    %c0_97 = arith.constant 0 : index
    %c0_98 = arith.constant 0 : index
    %206 = vector.load %arg14[%c1_96, %c0_97, %c0_98] : memref<3x16x16xbf16, #tpu.memory_space<vmem>>, vector<1x16x16xbf16>
    %207 = vector.shape_cast %206 : vector<1x16x16xbf16> to vector<16x16xbf16>
    %cst_99 = arith.constant dense<0.000000e+00> : vector<32x16xf32>
    %208 = tpu.matmul %205, %207, %cst_99 {dimension_numbers = #tpu.dot_dimension_numbers<[1], [0], [0], [1], [0, 0, 1, 1], [], []>} : vector<32x16xbf16>, vector<16x16xbf16>, vector<32x16xf32> -> vector<32x16xf32>
    %209 = arith.addf %201, %208 : vector<32x16xf32>
    %210 = vector.extract_strided_slice %190 {offsets = [16, 0], sizes = [16, 16], strides = [1, 1]} : vector<32x16xf32> to vector<16x16xf32>
    %211 = vector.extract_strided_slice %192 {offsets = [16, 0], sizes = [16, 16], strides = [1, 1]} : vector<32x16xf32> to vector<16x16xf32>
    %212 = tpu.concatenate %210, %211 in 0 : vector<16x16xf32>, vector<16x16xf32> -> vector<32x16xf32>
    %213 = arith.truncf %212 : vector<32x16xf32> to vector<32x16xbf16>
    %c2_100 = arith.constant 2 : index
    %c0_101 = arith.constant 0 : index
    %c0_102 = arith.constant 0 : index
    %214 = vector.load %arg14[%c2_100, %c0_101, %c0_102] : memref<3x16x16xbf16, #tpu.memory_space<vmem>>, vector<1x16x16xbf16>
    %215 = vector.shape_cast %214 : vector<1x16x16xbf16> to vector<16x16xbf16>
    %cst_103 = arith.constant dense<0.000000e+00> : vector<32x16xf32>
    %216 = tpu.matmul %213, %215, %cst_103 {dimension_numbers = #tpu.dot_dimension_numbers<[1], [0], [0], [1], [0, 0, 1, 1], [], []>} : vector<32x16xbf16>, vector<16x16xbf16>, vector<32x16xf32> -> vector<32x16xf32>
    %217 = arith.addf %209, %216 : vector<32x16xf32>
    %c0_104 = arith.constant 0 : index
    %c0_105 = arith.constant 0 : index
    %218 = vector.load %arg15[%c0_104, %c0_105] : memref<1x16xf32, #tpu.memory_space<vmem>>, vector<1x16xf32>
    %219 = vector.broadcast %218 : vector<1x16xf32> to vector<32x16xf32>
    %220 = arith.addf %217, %219 : vector<32x16xf32>
    %cst_106 = arith.constant 0.000000e+00 : f32
    %221 = vector.broadcast %cst_106 : f32 to vector<32x16xf32>
    %222 = arith.maximumf %220, %221 : vector<32x16xf32>
    %223 = arith.addf %222, %152 : vector<32x16xf32>
    %cst_107 = arith.constant 0.000000e+00 : f32
    %224 = vector.broadcast %cst_107 : f32 to vector<32x16xf32>
    %225 = arith.maximumf %223, %224 : vector<32x16xf32>
    %cst_108 = arith.constant 0.000000e+00 : f32
    %226 = vector.broadcast %cst_108 : f32 to vector<16x16xf32>
    %227 = vector.extract_strided_slice %225 {offsets = [0, 0], sizes = [16, 16], strides = [1, 1]} : vector<32x16xf32> to vector<16x16xf32>
    %228 = tpu.concatenate %226, %227 in 0 : vector<16x16xf32>, vector<16x16xf32> -> vector<32x16xf32>
    %229 = vector.extract_strided_slice %225 {offsets = [16, 0], sizes = [16, 16], strides = [1, 1]} : vector<32x16xf32> to vector<16x16xf32>
    %230 = tpu.concatenate %226, %229 in 0 : vector<16x16xf32>, vector<16x16xf32> -> vector<32x16xf32>
    %cst_109 = arith.constant 0.000000e+00 : f32
    %231 = vector.broadcast %cst_109 : f32 to vector<32x16xf32>
    %232 = vector.extract_strided_slice %228 {offsets = [8, 0], sizes = [16, 16], strides = [1, 1]} : vector<32x16xf32> to vector<16x16xf32>
    %233 = vector.extract_strided_slice %230 {offsets = [8, 0], sizes = [16, 16], strides = [1, 1]} : vector<32x16xf32> to vector<16x16xf32>
    %234 = tpu.concatenate %232, %233 in 0 : vector<16x16xf32>, vector<16x16xf32> -> vector<32x16xf32>
    %235 = arith.truncf %234 : vector<32x16xf32> to vector<32x16xbf16>
    %c1_110 = arith.constant 1 : index
    %c0_111 = arith.constant 0 : index
    %c0_112 = arith.constant 0 : index
    %236 = vector.load %arg16[%c1_110, %c0_111, %c0_112] : memref<3x16x16xbf16, #tpu.memory_space<vmem>>, vector<1x16x16xbf16>
    %237 = vector.shape_cast %236 : vector<1x16x16xbf16> to vector<16x16xbf16>
    %cst_113 = arith.constant dense<0.000000e+00> : vector<32x16xf32>
    %238 = tpu.matmul %235, %237, %cst_113 {dimension_numbers = #tpu.dot_dimension_numbers<[1], [0], [0], [1], [0, 0, 1, 1], [], []>} : vector<32x16xbf16>, vector<16x16xbf16>, vector<32x16xf32> -> vector<32x16xf32>
    %239 = arith.addf %231, %238 : vector<32x16xf32>
    %240 = vector.extract_strided_slice %228 {offsets = [16, 0], sizes = [16, 16], strides = [1, 1]} : vector<32x16xf32> to vector<16x16xf32>
    %241 = vector.extract_strided_slice %230 {offsets = [16, 0], sizes = [16, 16], strides = [1, 1]} : vector<32x16xf32> to vector<16x16xf32>
    %242 = tpu.concatenate %240, %241 in 0 : vector<16x16xf32>, vector<16x16xf32> -> vector<32x16xf32>
    %243 = arith.truncf %242 : vector<32x16xf32> to vector<32x16xbf16>
    %c2_114 = arith.constant 2 : index
    %c0_115 = arith.constant 0 : index
    %c0_116 = arith.constant 0 : index
    %244 = vector.load %arg16[%c2_114, %c0_115, %c0_116] : memref<3x16x16xbf16, #tpu.memory_space<vmem>>, vector<1x16x16xbf16>
    %245 = vector.shape_cast %244 : vector<1x16x16xbf16> to vector<16x16xbf16>
    %cst_117 = arith.constant dense<0.000000e+00> : vector<32x16xf32>
    %246 = tpu.matmul %243, %245, %cst_117 {dimension_numbers = #tpu.dot_dimension_numbers<[1], [0], [0], [1], [0, 0, 1, 1], [], []>} : vector<32x16xbf16>, vector<16x16xbf16>, vector<32x16xf32> -> vector<32x16xf32>
    %247 = arith.addf %239, %246 : vector<32x16xf32>
    %c0_118 = arith.constant 0 : index
    %c0_119 = arith.constant 0 : index
    %248 = vector.load %arg17[%c0_118, %c0_119] : memref<1x16xf32, #tpu.memory_space<vmem>>, vector<1x16xf32>
    %249 = vector.broadcast %248 : vector<1x16xf32> to vector<32x16xf32>
    %250 = arith.addf %247, %249 : vector<32x16xf32>
    %cst_120 = arith.constant 0.000000e+00 : f32
    %251 = vector.broadcast %cst_120 : f32 to vector<32x16xf32>
    %252 = arith.maximumf %250, %251 : vector<32x16xf32>
    %cst_121 = arith.constant 0.000000e+00 : f32
    %253 = vector.broadcast %cst_121 : f32 to vector<16x16xf32>
    %254 = vector.extract_strided_slice %252 {offsets = [0, 0], sizes = [16, 16], strides = [1, 1]} : vector<32x16xf32> to vector<16x16xf32>
    %255 = tpu.concatenate %253, %254 in 0 : vector<16x16xf32>, vector<16x16xf32> -> vector<32x16xf32>
    %256 = vector.extract_strided_slice %252 {offsets = [16, 0], sizes = [16, 16], strides = [1, 1]} : vector<32x16xf32> to vector<16x16xf32>
    %257 = tpu.concatenate %253, %256 in 0 : vector<16x16xf32>, vector<16x16xf32> -> vector<32x16xf32>
    %cst_122 = arith.constant 0.000000e+00 : f32
    %258 = vector.broadcast %cst_122 : f32 to vector<32x16xf32>
    %259 = vector.extract_strided_slice %255 {offsets = [8, 0], sizes = [16, 16], strides = [1, 1]} : vector<32x16xf32> to vector<16x16xf32>
    %260 = vector.extract_strided_slice %257 {offsets = [8, 0], sizes = [16, 16], strides = [1, 1]} : vector<32x16xf32> to vector<16x16xf32>
    %261 = tpu.concatenate %259, %260 in 0 : vector<16x16xf32>, vector<16x16xf32> -> vector<32x16xf32>
    %262 = arith.truncf %261 : vector<32x16xf32> to vector<32x16xbf16>
    %c1_123 = arith.constant 1 : index
    %c0_124 = arith.constant 0 : index
    %c0_125 = arith.constant 0 : index
    %263 = vector.load %arg18[%c1_123, %c0_124, %c0_125] : memref<3x16x16xbf16, #tpu.memory_space<vmem>>, vector<1x16x16xbf16>
    %264 = vector.shape_cast %263 : vector<1x16x16xbf16> to vector<16x16xbf16>
    %cst_126 = arith.constant dense<0.000000e+00> : vector<32x16xf32>
    %265 = tpu.matmul %262, %264, %cst_126 {dimension_numbers = #tpu.dot_dimension_numbers<[1], [0], [0], [1], [0, 0, 1, 1], [], []>} : vector<32x16xbf16>, vector<16x16xbf16>, vector<32x16xf32> -> vector<32x16xf32>
    %266 = arith.addf %258, %265 : vector<32x16xf32>
    %267 = vector.extract_strided_slice %255 {offsets = [16, 0], sizes = [16, 16], strides = [1, 1]} : vector<32x16xf32> to vector<16x16xf32>
    %268 = vector.extract_strided_slice %257 {offsets = [16, 0], sizes = [16, 16], strides = [1, 1]} : vector<32x16xf32> to vector<16x16xf32>
    %269 = tpu.concatenate %267, %268 in 0 : vector<16x16xf32>, vector<16x16xf32> -> vector<32x16xf32>
    %270 = arith.truncf %269 : vector<32x16xf32> to vector<32x16xbf16>
    %c2_127 = arith.constant 2 : index
    %c0_128 = arith.constant 0 : index
    %c0_129 = arith.constant 0 : index
    %271 = vector.load %arg18[%c2_127, %c0_128, %c0_129] : memref<3x16x16xbf16, #tpu.memory_space<vmem>>, vector<1x16x16xbf16>
    %272 = vector.shape_cast %271 : vector<1x16x16xbf16> to vector<16x16xbf16>
    %cst_130 = arith.constant dense<0.000000e+00> : vector<32x16xf32>
    %273 = tpu.matmul %270, %272, %cst_130 {dimension_numbers = #tpu.dot_dimension_numbers<[1], [0], [0], [1], [0, 0, 1, 1], [], []>} : vector<32x16xbf16>, vector<16x16xbf16>, vector<32x16xf32> -> vector<32x16xf32>
    %274 = arith.addf %266, %273 : vector<32x16xf32>
    %c0_131 = arith.constant 0 : index
    %c0_132 = arith.constant 0 : index
    %275 = vector.load %arg19[%c0_131, %c0_132] : memref<1x16xf32, #tpu.memory_space<vmem>>, vector<1x16xf32>
    %276 = vector.broadcast %275 : vector<1x16xf32> to vector<32x16xf32>
    %277 = arith.addf %274, %276 : vector<32x16xf32>
    %cst_133 = arith.constant 0.000000e+00 : f32
    %278 = vector.broadcast %cst_133 : f32 to vector<32x16xf32>
    %279 = arith.maximumf %277, %278 : vector<32x16xf32>
    %280 = arith.addf %279, %225 : vector<32x16xf32>
    %cst_134 = arith.constant 0.000000e+00 : f32
    %281 = vector.broadcast %cst_134 : f32 to vector<32x16xf32>
    %282 = arith.maximumf %280, %281 : vector<32x16xf32>
    %c0_135 = arith.constant 0 : index
    %c0_136 = arith.constant 0 : index
    %c0_137 = arith.constant 0 : index
    %283 = vector.load %arg20[%c0_135, %c0_136, %c0_137] : memref<16x16x16xbf16, #tpu.memory_space<vmem>>, vector<16x16x16xbf16>
    %c0_138 = arith.constant 0 : index
    %c0_139 = arith.constant 0 : index
    %284 = vector.load %arg21[%c0_138, %c0_139] : memref<1x16xf32, #tpu.memory_space<vmem>>, vector<1x16xf32>
    %285 = vector.extract_strided_slice %282 {offsets = [0, 0], sizes = [1, 16], strides = [1, 1]} : vector<32x16xf32> to vector<1x16xf32>
    %286 = arith.truncf %285 : vector<1x16xf32> to vector<1x16xbf16>
    %287 = vector.extract_strided_slice %283 {offsets = [0, 0, 0], sizes = [1, 16, 16], strides = [1, 1, 1]} : vector<16x16x16xbf16> to vector<1x16x16xbf16>
    %288 = vector.shape_cast %287 : vector<1x16x16xbf16> to vector<16x16xbf16>
    %cst_140 = arith.constant dense<0.000000e+00> : vector<1x16xf32>
    %289 = tpu.matmul %286, %288, %cst_140 {dimension_numbers = #tpu.dot_dimension_numbers<[1], [0], [0], [1], [0, 0, 1, 1], [], []>} : vector<1x16xbf16>, vector<16x16xbf16>, vector<1x16xf32> -> vector<1x16xf32>
    %290 = arith.addf %284, %289 : vector<1x16xf32>
    %291 = vector.extract_strided_slice %282 {offsets = [1, 0], sizes = [1, 16], strides = [1, 1]} : vector<32x16xf32> to vector<1x16xf32>
    %292 = arith.truncf %291 : vector<1x16xf32> to vector<1x16xbf16>
    %293 = vector.extract_strided_slice %283 {offsets = [1, 0, 0], sizes = [1, 16, 16], strides = [1, 1, 1]} : vector<16x16x16xbf16> to vector<1x16x16xbf16>
    %294 = vector.shape_cast %293 : vector<1x16x16xbf16> to vector<16x16xbf16>
    %cst_141 = arith.constant dense<0.000000e+00> : vector<1x16xf32>
    %295 = tpu.matmul %292, %294, %cst_141 {dimension_numbers = #tpu.dot_dimension_numbers<[1], [0], [0], [1], [0, 0, 1, 1], [], []>} : vector<1x16xbf16>, vector<16x16xbf16>, vector<1x16xf32> -> vector<1x16xf32>
    %296 = arith.addf %290, %295 : vector<1x16xf32>
    %297 = vector.extract_strided_slice %282 {offsets = [2, 0], sizes = [1, 16], strides = [1, 1]} : vector<32x16xf32> to vector<1x16xf32>
    %298 = arith.truncf %297 : vector<1x16xf32> to vector<1x16xbf16>
    %299 = vector.extract_strided_slice %283 {offsets = [2, 0, 0], sizes = [1, 16, 16], strides = [1, 1, 1]} : vector<16x16x16xbf16> to vector<1x16x16xbf16>
    %300 = vector.shape_cast %299 : vector<1x16x16xbf16> to vector<16x16xbf16>
    %cst_142 = arith.constant dense<0.000000e+00> : vector<1x16xf32>
    %301 = tpu.matmul %298, %300, %cst_142 {dimension_numbers = #tpu.dot_dimension_numbers<[1], [0], [0], [1], [0, 0, 1, 1], [], []>} : vector<1x16xbf16>, vector<16x16xbf16>, vector<1x16xf32> -> vector<1x16xf32>
    %302 = arith.addf %296, %301 : vector<1x16xf32>
    %303 = vector.extract_strided_slice %282 {offsets = [3, 0], sizes = [1, 16], strides = [1, 1]} : vector<32x16xf32> to vector<1x16xf32>
    %304 = arith.truncf %303 : vector<1x16xf32> to vector<1x16xbf16>
    %305 = vector.extract_strided_slice %283 {offsets = [3, 0, 0], sizes = [1, 16, 16], strides = [1, 1, 1]} : vector<16x16x16xbf16> to vector<1x16x16xbf16>
    %306 = vector.shape_cast %305 : vector<1x16x16xbf16> to vector<16x16xbf16>
    %cst_143 = arith.constant dense<0.000000e+00> : vector<1x16xf32>
    %307 = tpu.matmul %304, %306, %cst_143 {dimension_numbers = #tpu.dot_dimension_numbers<[1], [0], [0], [1], [0, 0, 1, 1], [], []>} : vector<1x16xbf16>, vector<16x16xbf16>, vector<1x16xf32> -> vector<1x16xf32>
    %308 = arith.addf %302, %307 : vector<1x16xf32>
    %309 = vector.extract_strided_slice %282 {offsets = [4, 0], sizes = [1, 16], strides = [1, 1]} : vector<32x16xf32> to vector<1x16xf32>
    %310 = arith.truncf %309 : vector<1x16xf32> to vector<1x16xbf16>
    %311 = vector.extract_strided_slice %283 {offsets = [4, 0, 0], sizes = [1, 16, 16], strides = [1, 1, 1]} : vector<16x16x16xbf16> to vector<1x16x16xbf16>
    %312 = vector.shape_cast %311 : vector<1x16x16xbf16> to vector<16x16xbf16>
    %cst_144 = arith.constant dense<0.000000e+00> : vector<1x16xf32>
    %313 = tpu.matmul %310, %312, %cst_144 {dimension_numbers = #tpu.dot_dimension_numbers<[1], [0], [0], [1], [0, 0, 1, 1], [], []>} : vector<1x16xbf16>, vector<16x16xbf16>, vector<1x16xf32> -> vector<1x16xf32>
    %314 = arith.addf %308, %313 : vector<1x16xf32>
    %315 = vector.extract_strided_slice %282 {offsets = [5, 0], sizes = [1, 16], strides = [1, 1]} : vector<32x16xf32> to vector<1x16xf32>
    %316 = arith.truncf %315 : vector<1x16xf32> to vector<1x16xbf16>
    %317 = vector.extract_strided_slice %283 {offsets = [5, 0, 0], sizes = [1, 16, 16], strides = [1, 1, 1]} : vector<16x16x16xbf16> to vector<1x16x16xbf16>
    %318 = vector.shape_cast %317 : vector<1x16x16xbf16> to vector<16x16xbf16>
    %cst_145 = arith.constant dense<0.000000e+00> : vector<1x16xf32>
    %319 = tpu.matmul %316, %318, %cst_145 {dimension_numbers = #tpu.dot_dimension_numbers<[1], [0], [0], [1], [0, 0, 1, 1], [], []>} : vector<1x16xbf16>, vector<16x16xbf16>, vector<1x16xf32> -> vector<1x16xf32>
    %320 = arith.addf %314, %319 : vector<1x16xf32>
    %321 = vector.extract_strided_slice %282 {offsets = [6, 0], sizes = [1, 16], strides = [1, 1]} : vector<32x16xf32> to vector<1x16xf32>
    %322 = arith.truncf %321 : vector<1x16xf32> to vector<1x16xbf16>
    %323 = vector.extract_strided_slice %283 {offsets = [6, 0, 0], sizes = [1, 16, 16], strides = [1, 1, 1]} : vector<16x16x16xbf16> to vector<1x16x16xbf16>
    %324 = vector.shape_cast %323 : vector<1x16x16xbf16> to vector<16x16xbf16>
    %cst_146 = arith.constant dense<0.000000e+00> : vector<1x16xf32>
    %325 = tpu.matmul %322, %324, %cst_146 {dimension_numbers = #tpu.dot_dimension_numbers<[1], [0], [0], [1], [0, 0, 1, 1], [], []>} : vector<1x16xbf16>, vector<16x16xbf16>, vector<1x16xf32> -> vector<1x16xf32>
    %326 = arith.addf %320, %325 : vector<1x16xf32>
    %327 = vector.extract_strided_slice %282 {offsets = [7, 0], sizes = [1, 16], strides = [1, 1]} : vector<32x16xf32> to vector<1x16xf32>
    %328 = arith.truncf %327 : vector<1x16xf32> to vector<1x16xbf16>
    %329 = vector.extract_strided_slice %283 {offsets = [7, 0, 0], sizes = [1, 16, 16], strides = [1, 1, 1]} : vector<16x16x16xbf16> to vector<1x16x16xbf16>
    %330 = vector.shape_cast %329 : vector<1x16x16xbf16> to vector<16x16xbf16>
    %cst_147 = arith.constant dense<0.000000e+00> : vector<1x16xf32>
    %331 = tpu.matmul %328, %330, %cst_147 {dimension_numbers = #tpu.dot_dimension_numbers<[1], [0], [0], [1], [0, 0, 1, 1], [], []>} : vector<1x16xbf16>, vector<16x16xbf16>, vector<1x16xf32> -> vector<1x16xf32>
    %332 = arith.addf %326, %331 : vector<1x16xf32>
    %333 = vector.extract_strided_slice %282 {offsets = [8, 0], sizes = [1, 16], strides = [1, 1]} : vector<32x16xf32> to vector<1x16xf32>
    %334 = arith.truncf %333 : vector<1x16xf32> to vector<1x16xbf16>
    %335 = vector.extract_strided_slice %283 {offsets = [8, 0, 0], sizes = [1, 16, 16], strides = [1, 1, 1]} : vector<16x16x16xbf16> to vector<1x16x16xbf16>
    %336 = vector.shape_cast %335 : vector<1x16x16xbf16> to vector<16x16xbf16>
    %cst_148 = arith.constant dense<0.000000e+00> : vector<1x16xf32>
    %337 = tpu.matmul %334, %336, %cst_148 {dimension_numbers = #tpu.dot_dimension_numbers<[1], [0], [0], [1], [0, 0, 1, 1], [], []>} : vector<1x16xbf16>, vector<16x16xbf16>, vector<1x16xf32> -> vector<1x16xf32>
    %338 = arith.addf %332, %337 : vector<1x16xf32>
    %339 = vector.extract_strided_slice %282 {offsets = [9, 0], sizes = [1, 16], strides = [1, 1]} : vector<32x16xf32> to vector<1x16xf32>
    %340 = arith.truncf %339 : vector<1x16xf32> to vector<1x16xbf16>
    %341 = vector.extract_strided_slice %283 {offsets = [9, 0, 0], sizes = [1, 16, 16], strides = [1, 1, 1]} : vector<16x16x16xbf16> to vector<1x16x16xbf16>
    %342 = vector.shape_cast %341 : vector<1x16x16xbf16> to vector<16x16xbf16>
    %cst_149 = arith.constant dense<0.000000e+00> : vector<1x16xf32>
    %343 = tpu.matmul %340, %342, %cst_149 {dimension_numbers = #tpu.dot_dimension_numbers<[1], [0], [0], [1], [0, 0, 1, 1], [], []>} : vector<1x16xbf16>, vector<16x16xbf16>, vector<1x16xf32> -> vector<1x16xf32>
    %344 = arith.addf %338, %343 : vector<1x16xf32>
    %345 = vector.extract_strided_slice %282 {offsets = [10, 0], sizes = [1, 16], strides = [1, 1]} : vector<32x16xf32> to vector<1x16xf32>
    %346 = arith.truncf %345 : vector<1x16xf32> to vector<1x16xbf16>
    %347 = vector.extract_strided_slice %283 {offsets = [10, 0, 0], sizes = [1, 16, 16], strides = [1, 1, 1]} : vector<16x16x16xbf16> to vector<1x16x16xbf16>
    %348 = vector.shape_cast %347 : vector<1x16x16xbf16> to vector<16x16xbf16>
    %cst_150 = arith.constant dense<0.000000e+00> : vector<1x16xf32>
    %349 = tpu.matmul %346, %348, %cst_150 {dimension_numbers = #tpu.dot_dimension_numbers<[1], [0], [0], [1], [0, 0, 1, 1], [], []>} : vector<1x16xbf16>, vector<16x16xbf16>, vector<1x16xf32> -> vector<1x16xf32>
    %350 = arith.addf %344, %349 : vector<1x16xf32>
    %351 = vector.extract_strided_slice %282 {offsets = [11, 0], sizes = [1, 16], strides = [1, 1]} : vector<32x16xf32> to vector<1x16xf32>
    %352 = arith.truncf %351 : vector<1x16xf32> to vector<1x16xbf16>
    %353 = vector.extract_strided_slice %283 {offsets = [11, 0, 0], sizes = [1, 16, 16], strides = [1, 1, 1]} : vector<16x16x16xbf16> to vector<1x16x16xbf16>
    %354 = vector.shape_cast %353 : vector<1x16x16xbf16> to vector<16x16xbf16>
    %cst_151 = arith.constant dense<0.000000e+00> : vector<1x16xf32>
    %355 = tpu.matmul %352, %354, %cst_151 {dimension_numbers = #tpu.dot_dimension_numbers<[1], [0], [0], [1], [0, 0, 1, 1], [], []>} : vector<1x16xbf16>, vector<16x16xbf16>, vector<1x16xf32> -> vector<1x16xf32>
    %356 = arith.addf %350, %355 : vector<1x16xf32>
    %357 = vector.extract_strided_slice %282 {offsets = [12, 0], sizes = [1, 16], strides = [1, 1]} : vector<32x16xf32> to vector<1x16xf32>
    %358 = arith.truncf %357 : vector<1x16xf32> to vector<1x16xbf16>
    %359 = vector.extract_strided_slice %283 {offsets = [12, 0, 0], sizes = [1, 16, 16], strides = [1, 1, 1]} : vector<16x16x16xbf16> to vector<1x16x16xbf16>
    %360 = vector.shape_cast %359 : vector<1x16x16xbf16> to vector<16x16xbf16>
    %cst_152 = arith.constant dense<0.000000e+00> : vector<1x16xf32>
    %361 = tpu.matmul %358, %360, %cst_152 {dimension_numbers = #tpu.dot_dimension_numbers<[1], [0], [0], [1], [0, 0, 1, 1], [], []>} : vector<1x16xbf16>, vector<16x16xbf16>, vector<1x16xf32> -> vector<1x16xf32>
    %362 = arith.addf %356, %361 : vector<1x16xf32>
    %363 = vector.extract_strided_slice %282 {offsets = [13, 0], sizes = [1, 16], strides = [1, 1]} : vector<32x16xf32> to vector<1x16xf32>
    %364 = arith.truncf %363 : vector<1x16xf32> to vector<1x16xbf16>
    %365 = vector.extract_strided_slice %283 {offsets = [13, 0, 0], sizes = [1, 16, 16], strides = [1, 1, 1]} : vector<16x16x16xbf16> to vector<1x16x16xbf16>
    %366 = vector.shape_cast %365 : vector<1x16x16xbf16> to vector<16x16xbf16>
    %cst_153 = arith.constant dense<0.000000e+00> : vector<1x16xf32>
    %367 = tpu.matmul %364, %366, %cst_153 {dimension_numbers = #tpu.dot_dimension_numbers<[1], [0], [0], [1], [0, 0, 1, 1], [], []>} : vector<1x16xbf16>, vector<16x16xbf16>, vector<1x16xf32> -> vector<1x16xf32>
    %368 = arith.addf %362, %367 : vector<1x16xf32>
    %369 = vector.extract_strided_slice %282 {offsets = [14, 0], sizes = [1, 16], strides = [1, 1]} : vector<32x16xf32> to vector<1x16xf32>
    %370 = arith.truncf %369 : vector<1x16xf32> to vector<1x16xbf16>
    %371 = vector.extract_strided_slice %283 {offsets = [14, 0, 0], sizes = [1, 16, 16], strides = [1, 1, 1]} : vector<16x16x16xbf16> to vector<1x16x16xbf16>
    %372 = vector.shape_cast %371 : vector<1x16x16xbf16> to vector<16x16xbf16>
    %cst_154 = arith.constant dense<0.000000e+00> : vector<1x16xf32>
    %373 = tpu.matmul %370, %372, %cst_154 {dimension_numbers = #tpu.dot_dimension_numbers<[1], [0], [0], [1], [0, 0, 1, 1], [], []>} : vector<1x16xbf16>, vector<16x16xbf16>, vector<1x16xf32> -> vector<1x16xf32>
    %374 = arith.addf %368, %373 : vector<1x16xf32>
    %375 = vector.extract_strided_slice %282 {offsets = [15, 0], sizes = [1, 16], strides = [1, 1]} : vector<32x16xf32> to vector<1x16xf32>
    %376 = arith.truncf %375 : vector<1x16xf32> to vector<1x16xbf16>
    %377 = vector.extract_strided_slice %283 {offsets = [15, 0, 0], sizes = [1, 16, 16], strides = [1, 1, 1]} : vector<16x16x16xbf16> to vector<1x16x16xbf16>
    %378 = vector.shape_cast %377 : vector<1x16x16xbf16> to vector<16x16xbf16>
    %cst_155 = arith.constant dense<0.000000e+00> : vector<1x16xf32>
    %379 = tpu.matmul %376, %378, %cst_155 {dimension_numbers = #tpu.dot_dimension_numbers<[1], [0], [0], [1], [0, 0, 1, 1], [], []>} : vector<1x16xbf16>, vector<16x16xbf16>, vector<1x16xf32> -> vector<1x16xf32>
    %380 = arith.addf %374, %379 : vector<1x16xf32>
    %cst_156 = arith.constant dense<0xFF800000> : vector<1xf32>
    %381 = vector.multi_reduction <maximumf>, %380, %cst_156 [1] : vector<1x16xf32> to vector<1xf32>
    %382 = vector.shape_cast %381 : vector<1xf32> to vector<1x1xf32>
    %383 = vector.broadcast %382 : vector<1x1xf32> to vector<1x16xf32>
    %384 = arith.subf %380, %383 : vector<1x16xf32>
    %385 = math.exp %384 : vector<1x16xf32>
    %cst_157 = arith.constant dense<0.000000e+00> : vector<1xf32>
    %386 = vector.multi_reduction <add>, %385, %cst_157 [1] : vector<1x16xf32> to vector<1xf32>
    %387 = vector.shape_cast %386 : vector<1xf32> to vector<1x1xf32>
    %388 = tpu.reciprocal %387 {approx = true} : vector<1x1xf32> -> vector<1x1xf32>
    %389 = vector.broadcast %388 : vector<1x1xf32> to vector<1x16xf32>
    %390 = arith.mulf %385, %389 : vector<1x16xf32>
    %c0_158 = arith.constant 0 : index
    %c0_159 = arith.constant 0 : index
    %c0_160 = arith.constant 0 : index
    %391 = vector.load %arg22[%c0_158, %c0_159, %c0_160] : memref<2x1x16xf32, #tpu.memory_space<vmem>>, vector<1x1x16xf32>
    %392 = vector.shape_cast %391 : vector<1x1x16xf32> to vector<1x16xf32>
    %393 = vector.shape_cast %390 : vector<1x16xf32> to vector<1x1x16xf32>
    tpu.vector_store %arg22[%c0_158, %c0_159, %c0_160], %393 {strides = array<i32>} : memref<2x1x16xf32, #tpu.memory_space<vmem>>, vector<1x1x16xf32>,
    %394 = vector.extract_strided_slice %282 {offsets = [16, 0], sizes = [1, 16], strides = [1, 1]} : vector<32x16xf32> to vector<1x16xf32>
    %395 = arith.truncf %394 : vector<1x16xf32> to vector<1x16xbf16>
    %396 = vector.extract_strided_slice %283 {offsets = [0, 0, 0], sizes = [1, 16, 16], strides = [1, 1, 1]} : vector<16x16x16xbf16> to vector<1x16x16xbf16>
    %397 = vector.shape_cast %396 : vector<1x16x16xbf16> to vector<16x16xbf16>
    %cst_161 = arith.constant dense<0.000000e+00> : vector<1x16xf32>
    %398 = tpu.matmul %395, %397, %cst_161 {dimension_numbers = #tpu.dot_dimension_numbers<[1], [0], [0], [1], [0, 0, 1, 1], [], []>} : vector<1x16xbf16>, vector<16x16xbf16>, vector<1x16xf32> -> vector<1x16xf32>
    %399 = arith.addf %284, %398 : vector<1x16xf32>
    %400 = vector.extract_strided_slice %282 {offsets = [17, 0], sizes = [1, 16], strides = [1, 1]} : vector<32x16xf32> to vector<1x16xf32>
    %401 = arith.truncf %400 : vector<1x16xf32> to vector<1x16xbf16>
    %402 = vector.extract_strided_slice %283 {offsets = [1, 0, 0], sizes = [1, 16, 16], strides = [1, 1, 1]} : vector<16x16x16xbf16> to vector<1x16x16xbf16>
    %403 = vector.shape_cast %402 : vector<1x16x16xbf16> to vector<16x16xbf16>
    %cst_162 = arith.constant dense<0.000000e+00> : vector<1x16xf32>
    %404 = tpu.matmul %401, %403, %cst_162 {dimension_numbers = #tpu.dot_dimension_numbers<[1], [0], [0], [1], [0, 0, 1, 1], [], []>} : vector<1x16xbf16>, vector<16x16xbf16>, vector<1x16xf32> -> vector<1x16xf32>
    %405 = arith.addf %399, %404 : vector<1x16xf32>
    %406 = vector.extract_strided_slice %282 {offsets = [18, 0], sizes = [1, 16], strides = [1, 1]} : vector<32x16xf32> to vector<1x16xf32>
    %407 = arith.truncf %406 : vector<1x16xf32> to vector<1x16xbf16>
    %408 = vector.extract_strided_slice %283 {offsets = [2, 0, 0], sizes = [1, 16, 16], strides = [1, 1, 1]} : vector<16x16x16xbf16> to vector<1x16x16xbf16>
    %409 = vector.shape_cast %408 : vector<1x16x16xbf16> to vector<16x16xbf16>
    %cst_163 = arith.constant dense<0.000000e+00> : vector<1x16xf32>
    %410 = tpu.matmul %407, %409, %cst_163 {dimension_numbers = #tpu.dot_dimension_numbers<[1], [0], [0], [1], [0, 0, 1, 1], [], []>} : vector<1x16xbf16>, vector<16x16xbf16>, vector<1x16xf32> -> vector<1x16xf32>
    %411 = arith.addf %405, %410 : vector<1x16xf32>
    %412 = vector.extract_strided_slice %282 {offsets = [19, 0], sizes = [1, 16], strides = [1, 1]} : vector<32x16xf32> to vector<1x16xf32>
    %413 = arith.truncf %412 : vector<1x16xf32> to vector<1x16xbf16>
    %414 = vector.extract_strided_slice %283 {offsets = [3, 0, 0], sizes = [1, 16, 16], strides = [1, 1, 1]} : vector<16x16x16xbf16> to vector<1x16x16xbf16>
    %415 = vector.shape_cast %414 : vector<1x16x16xbf16> to vector<16x16xbf16>
    %cst_164 = arith.constant dense<0.000000e+00> : vector<1x16xf32>
    %416 = tpu.matmul %413, %415, %cst_164 {dimension_numbers = #tpu.dot_dimension_numbers<[1], [0], [0], [1], [0, 0, 1, 1], [], []>} : vector<1x16xbf16>, vector<16x16xbf16>, vector<1x16xf32> -> vector<1x16xf32>
    %417 = arith.addf %411, %416 : vector<1x16xf32>
    %418 = vector.extract_strided_slice %282 {offsets = [20, 0], sizes = [1, 16], strides = [1, 1]} : vector<32x16xf32> to vector<1x16xf32>
    %419 = arith.truncf %418 : vector<1x16xf32> to vector<1x16xbf16>
    %420 = vector.extract_strided_slice %283 {offsets = [4, 0, 0], sizes = [1, 16, 16], strides = [1, 1, 1]} : vector<16x16x16xbf16> to vector<1x16x16xbf16>
    %421 = vector.shape_cast %420 : vector<1x16x16xbf16> to vector<16x16xbf16>
    %cst_165 = arith.constant dense<0.000000e+00> : vector<1x16xf32>
    %422 = tpu.matmul %419, %421, %cst_165 {dimension_numbers = #tpu.dot_dimension_numbers<[1], [0], [0], [1], [0, 0, 1, 1], [], []>} : vector<1x16xbf16>, vector<16x16xbf16>, vector<1x16xf32> -> vector<1x16xf32>
    %423 = arith.addf %417, %422 : vector<1x16xf32>
    %424 = vector.extract_strided_slice %282 {offsets = [21, 0], sizes = [1, 16], strides = [1, 1]} : vector<32x16xf32> to vector<1x16xf32>
    %425 = arith.truncf %424 : vector<1x16xf32> to vector<1x16xbf16>
    %426 = vector.extract_strided_slice %283 {offsets = [5, 0, 0], sizes = [1, 16, 16], strides = [1, 1, 1]} : vector<16x16x16xbf16> to vector<1x16x16xbf16>
    %427 = vector.shape_cast %426 : vector<1x16x16xbf16> to vector<16x16xbf16>
    %cst_166 = arith.constant dense<0.000000e+00> : vector<1x16xf32>
    %428 = tpu.matmul %425, %427, %cst_166 {dimension_numbers = #tpu.dot_dimension_numbers<[1], [0], [0], [1], [0, 0, 1, 1], [], []>} : vector<1x16xbf16>, vector<16x16xbf16>, vector<1x16xf32> -> vector<1x16xf32>
    %429 = arith.addf %423, %428 : vector<1x16xf32>
    %430 = vector.extract_strided_slice %282 {offsets = [22, 0], sizes = [1, 16], strides = [1, 1]} : vector<32x16xf32> to vector<1x16xf32>
    %431 = arith.truncf %430 : vector<1x16xf32> to vector<1x16xbf16>
    %432 = vector.extract_strided_slice %283 {offsets = [6, 0, 0], sizes = [1, 16, 16], strides = [1, 1, 1]} : vector<16x16x16xbf16> to vector<1x16x16xbf16>
    %433 = vector.shape_cast %432 : vector<1x16x16xbf16> to vector<16x16xbf16>
    %cst_167 = arith.constant dense<0.000000e+00> : vector<1x16xf32>
    %434 = tpu.matmul %431, %433, %cst_167 {dimension_numbers = #tpu.dot_dimension_numbers<[1], [0], [0], [1], [0, 0, 1, 1], [], []>} : vector<1x16xbf16>, vector<16x16xbf16>, vector<1x16xf32> -> vector<1x16xf32>
    %435 = arith.addf %429, %434 : vector<1x16xf32>
    %436 = vector.extract_strided_slice %282 {offsets = [23, 0], sizes = [1, 16], strides = [1, 1]} : vector<32x16xf32> to vector<1x16xf32>
    %437 = arith.truncf %436 : vector<1x16xf32> to vector<1x16xbf16>
    %438 = vector.extract_strided_slice %283 {offsets = [7, 0, 0], sizes = [1, 16, 16], strides = [1, 1, 1]} : vector<16x16x16xbf16> to vector<1x16x16xbf16>
    %439 = vector.shape_cast %438 : vector<1x16x16xbf16> to vector<16x16xbf16>
    %cst_168 = arith.constant dense<0.000000e+00> : vector<1x16xf32>
    %440 = tpu.matmul %437, %439, %cst_168 {dimension_numbers = #tpu.dot_dimension_numbers<[1], [0], [0], [1], [0, 0, 1, 1], [], []>} : vector<1x16xbf16>, vector<16x16xbf16>, vector<1x16xf32> -> vector<1x16xf32>
    %441 = arith.addf %435, %440 : vector<1x16xf32>
    %442 = vector.extract_strided_slice %282 {offsets = [24, 0], sizes = [1, 16], strides = [1, 1]} : vector<32x16xf32> to vector<1x16xf32>
    %443 = arith.truncf %442 : vector<1x16xf32> to vector<1x16xbf16>
    %444 = vector.extract_strided_slice %283 {offsets = [8, 0, 0], sizes = [1, 16, 16], strides = [1, 1, 1]} : vector<16x16x16xbf16> to vector<1x16x16xbf16>
    %445 = vector.shape_cast %444 : vector<1x16x16xbf16> to vector<16x16xbf16>
    %cst_169 = arith.constant dense<0.000000e+00> : vector<1x16xf32>
    %446 = tpu.matmul %443, %445, %cst_169 {dimension_numbers = #tpu.dot_dimension_numbers<[1], [0], [0], [1], [0, 0, 1, 1], [], []>} : vector<1x16xbf16>, vector<16x16xbf16>, vector<1x16xf32> -> vector<1x16xf32>
    %447 = arith.addf %441, %446 : vector<1x16xf32>
    %448 = vector.extract_strided_slice %282 {offsets = [25, 0], sizes = [1, 16], strides = [1, 1]} : vector<32x16xf32> to vector<1x16xf32>
    %449 = arith.truncf %448 : vector<1x16xf32> to vector<1x16xbf16>
    %450 = vector.extract_strided_slice %283 {offsets = [9, 0, 0], sizes = [1, 16, 16], strides = [1, 1, 1]} : vector<16x16x16xbf16> to vector<1x16x16xbf16>
    %451 = vector.shape_cast %450 : vector<1x16x16xbf16> to vector<16x16xbf16>
    %cst_170 = arith.constant dense<0.000000e+00> : vector<1x16xf32>
    %452 = tpu.matmul %449, %451, %cst_170 {dimension_numbers = #tpu.dot_dimension_numbers<[1], [0], [0], [1], [0, 0, 1, 1], [], []>} : vector<1x16xbf16>, vector<16x16xbf16>, vector<1x16xf32> -> vector<1x16xf32>
    %453 = arith.addf %447, %452 : vector<1x16xf32>
    %454 = vector.extract_strided_slice %282 {offsets = [26, 0], sizes = [1, 16], strides = [1, 1]} : vector<32x16xf32> to vector<1x16xf32>
    %455 = arith.truncf %454 : vector<1x16xf32> to vector<1x16xbf16>
    %456 = vector.extract_strided_slice %283 {offsets = [10, 0, 0], sizes = [1, 16, 16], strides = [1, 1, 1]} : vector<16x16x16xbf16> to vector<1x16x16xbf16>
    %457 = vector.shape_cast %456 : vector<1x16x16xbf16> to vector<16x16xbf16>
    %cst_171 = arith.constant dense<0.000000e+00> : vector<1x16xf32>
    %458 = tpu.matmul %455, %457, %cst_171 {dimension_numbers = #tpu.dot_dimension_numbers<[1], [0], [0], [1], [0, 0, 1, 1], [], []>} : vector<1x16xbf16>, vector<16x16xbf16>, vector<1x16xf32> -> vector<1x16xf32>
    %459 = arith.addf %453, %458 : vector<1x16xf32>
    %460 = vector.extract_strided_slice %282 {offsets = [27, 0], sizes = [1, 16], strides = [1, 1]} : vector<32x16xf32> to vector<1x16xf32>
    %461 = arith.truncf %460 : vector<1x16xf32> to vector<1x16xbf16>
    %462 = vector.extract_strided_slice %283 {offsets = [11, 0, 0], sizes = [1, 16, 16], strides = [1, 1, 1]} : vector<16x16x16xbf16> to vector<1x16x16xbf16>
    %463 = vector.shape_cast %462 : vector<1x16x16xbf16> to vector<16x16xbf16>
    %cst_172 = arith.constant dense<0.000000e+00> : vector<1x16xf32>
    %464 = tpu.matmul %461, %463, %cst_172 {dimension_numbers = #tpu.dot_dimension_numbers<[1], [0], [0], [1], [0, 0, 1, 1], [], []>} : vector<1x16xbf16>, vector<16x16xbf16>, vector<1x16xf32> -> vector<1x16xf32>
    %465 = arith.addf %459, %464 : vector<1x16xf32>
    %466 = vector.extract_strided_slice %282 {offsets = [28, 0], sizes = [1, 16], strides = [1, 1]} : vector<32x16xf32> to vector<1x16xf32>
    %467 = arith.truncf %466 : vector<1x16xf32> to vector<1x16xbf16>
    %468 = vector.extract_strided_slice %283 {offsets = [12, 0, 0], sizes = [1, 16, 16], strides = [1, 1, 1]} : vector<16x16x16xbf16> to vector<1x16x16xbf16>
    %469 = vector.shape_cast %468 : vector<1x16x16xbf16> to vector<16x16xbf16>
    %cst_173 = arith.constant dense<0.000000e+00> : vector<1x16xf32>
    %470 = tpu.matmul %467, %469, %cst_173 {dimension_numbers = #tpu.dot_dimension_numbers<[1], [0], [0], [1], [0, 0, 1, 1], [], []>} : vector<1x16xbf16>, vector<16x16xbf16>, vector<1x16xf32> -> vector<1x16xf32>
    %471 = arith.addf %465, %470 : vector<1x16xf32>
    %472 = vector.extract_strided_slice %282 {offsets = [29, 0], sizes = [1, 16], strides = [1, 1]} : vector<32x16xf32> to vector<1x16xf32>
    %473 = arith.truncf %472 : vector<1x16xf32> to vector<1x16xbf16>
    %474 = vector.extract_strided_slice %283 {offsets = [13, 0, 0], sizes = [1, 16, 16], strides = [1, 1, 1]} : vector<16x16x16xbf16> to vector<1x16x16xbf16>
    %475 = vector.shape_cast %474 : vector<1x16x16xbf16> to vector<16x16xbf16>
    %cst_174 = arith.constant dense<0.000000e+00> : vector<1x16xf32>
    %476 = tpu.matmul %473, %475, %cst_174 {dimension_numbers = #tpu.dot_dimension_numbers<[1], [0], [0], [1], [0, 0, 1, 1], [], []>} : vector<1x16xbf16>, vector<16x16xbf16>, vector<1x16xf32> -> vector<1x16xf32>
    %477 = arith.addf %471, %476 : vector<1x16xf32>
    %478 = vector.extract_strided_slice %282 {offsets = [30, 0], sizes = [1, 16], strides = [1, 1]} : vector<32x16xf32> to vector<1x16xf32>
    %479 = arith.truncf %478 : vector<1x16xf32> to vector<1x16xbf16>
    %480 = vector.extract_strided_slice %283 {offsets = [14, 0, 0], sizes = [1, 16, 16], strides = [1, 1, 1]} : vector<16x16x16xbf16> to vector<1x16x16xbf16>
    %481 = vector.shape_cast %480 : vector<1x16x16xbf16> to vector<16x16xbf16>
    %cst_175 = arith.constant dense<0.000000e+00> : vector<1x16xf32>
    %482 = tpu.matmul %479, %481, %cst_175 {dimension_numbers = #tpu.dot_dimension_numbers<[1], [0], [0], [1], [0, 0, 1, 1], [], []>} : vector<1x16xbf16>, vector<16x16xbf16>, vector<1x16xf32> -> vector<1x16xf32>
    %483 = arith.addf %477, %482 : vector<1x16xf32>
    %484 = vector.extract_strided_slice %282 {offsets = [31, 0], sizes = [1, 16], strides = [1, 1]} : vector<32x16xf32> to vector<1x16xf32>
    %485 = arith.truncf %484 : vector<1x16xf32> to vector<1x16xbf16>
    %486 = vector.extract_strided_slice %283 {offsets = [15, 0, 0], sizes = [1, 16, 16], strides = [1, 1, 1]} : vector<16x16x16xbf16> to vector<1x16x16xbf16>
    %487 = vector.shape_cast %486 : vector<1x16x16xbf16> to vector<16x16xbf16>
    %cst_176 = arith.constant dense<0.000000e+00> : vector<1x16xf32>
    %488 = tpu.matmul %485, %487, %cst_176 {dimension_numbers = #tpu.dot_dimension_numbers<[1], [0], [0], [1], [0, 0, 1, 1], [], []>} : vector<1x16xbf16>, vector<16x16xbf16>, vector<1x16xf32> -> vector<1x16xf32>
    %489 = arith.addf %483, %488 : vector<1x16xf32>
    %cst_177 = arith.constant dense<0xFF800000> : vector<1xf32>
    %490 = vector.multi_reduction <maximumf>, %489, %cst_177 [1] : vector<1x16xf32> to vector<1xf32>
    %491 = vector.shape_cast %490 : vector<1xf32> to vector<1x1xf32>
    %492 = vector.broadcast %491 : vector<1x1xf32> to vector<1x16xf32>
    %493 = arith.subf %489, %492 : vector<1x16xf32>
    %494 = math.exp %493 : vector<1x16xf32>
    %cst_178 = arith.constant dense<0.000000e+00> : vector<1xf32>
    %495 = vector.multi_reduction <add>, %494, %cst_178 [1] : vector<1x16xf32> to vector<1xf32>
    %496 = vector.shape_cast %495 : vector<1xf32> to vector<1x1xf32>
    %497 = tpu.reciprocal %496 {approx = true} : vector<1x1xf32> -> vector<1x1xf32>
    %498 = vector.broadcast %497 : vector<1x1xf32> to vector<1x16xf32>
    %499 = arith.mulf %494, %498 : vector<1x16xf32>
    %c1_179 = arith.constant 1 : index
    %c0_180 = arith.constant 0 : index
    %c0_181 = arith.constant 0 : index
    %500 = vector.load %arg22[%c1_179, %c0_180, %c0_181] : memref<2x1x16xf32, #tpu.memory_space<vmem>>, vector<1x1x16xf32>
    %501 = vector.shape_cast %500 : vector<1x1x16xf32> to vector<1x16xf32>
    %502 = vector.shape_cast %499 : vector<1x16xf32> to vector<1x1x16xf32>
    tpu.vector_store %arg22[%c1_179, %c0_180, %c0_181], %502 {strides = array<i32>} : memref<2x1x16xf32, #tpu.memory_space<vmem>>, vector<1x1x16xf32>,
    return
  }
  func.func @transform_0(%arg0: i32) -> (i32, i32) {
    %c0_i32 = arith.constant 0 : i32
    %c0_i32_0 = arith.constant 0 : i32
    return %arg0, %c0_i32 : i32, i32
  }
  func.func @transform_1(%arg0: i32) -> (i32, i32, i32) {
    %c0_i32 = arith.constant 0 : i32
    %c0_i32_0 = arith.constant 0 : i32
    %c0_i32_1 = arith.constant 0 : i32
    %c0_i32_2 = arith.constant 0 : i32
    return %c0_i32, %c0_i32_0, %c0_i32_1 : i32, i32, i32
  }
  func.func @transform_2(%arg0: i32) -> (i32, i32) {
    %c0_i32 = arith.constant 0 : i32
    %c0_i32_0 = arith.constant 0 : i32
    %c0_i32_1 = arith.constant 0 : i32
    return %c0_i32, %c0_i32_0 : i32, i32
  }
  func.func @transform_3(%arg0: i32) -> (i32, i32, i32) {
    %c0_i32 = arith.constant 0 : i32
    %c0_i32_0 = arith.constant 0 : i32
    %c0_i32_1 = arith.constant 0 : i32
    %c0_i32_2 = arith.constant 0 : i32
    return %c0_i32, %c0_i32_0, %c0_i32_1 : i32, i32, i32
  }
  func.func @transform_4(%arg0: i32) -> (i32, i32) {
    %c0_i32 = arith.constant 0 : i32
    %c0_i32_0 = arith.constant 0 : i32
    %c0_i32_1 = arith.constant 0 : i32
    return %c0_i32, %c0_i32_0 : i32, i32
  }
  func.func @transform_5(%arg0: i32) -> (i32, i32) {
    %c0_i32 = arith.constant 0 : i32
    %c0_i32_0 = arith.constant 0 : i32
    %c0_i32_1 = arith.constant 0 : i32
    return %c0_i32, %c0_i32_0 : i32, i32
  }
  func.func @transform_6(%arg0: i32) -> (i32, i32) {
    %c0_i32 = arith.constant 0 : i32
    %c0_i32_0 = arith.constant 0 : i32
    %c0_i32_1 = arith.constant 0 : i32
    return %c0_i32, %c0_i32_0 : i32, i32
  }
  func.func @transform_7(%arg0: i32) -> (i32, i32, i32) {
    %c0_i32 = arith.constant 0 : i32
    %c0_i32_0 = arith.constant 0 : i32
    %c0_i32_1 = arith.constant 0 : i32
    %c0_i32_2 = arith.constant 0 : i32
    return %c0_i32, %c0_i32_0, %c0_i32_1 : i32, i32, i32
  }
  func.func @transform_8(%arg0: i32) -> (i32, i32) {
    %c0_i32 = arith.constant 0 : i32
    %c0_i32_0 = arith.constant 0 : i32
    %c0_i32_1 = arith.constant 0 : i32
    return %c0_i32, %c0_i32_0 : i32, i32
  }
  func.func @transform_9(%arg0: i32) -> (i32, i32, i32) {
    %c0_i32 = arith.constant 0 : i32
    %c0_i32_0 = arith.constant 0 : i32
    %c0_i32_1 = arith.constant 0 : i32
    %c0_i32_2 = arith.constant 0 : i32
    return %c0_i32, %c0_i32_0, %c0_i32_1 : i32, i32, i32
  }
  func.func @transform_10(%arg0: i32) -> (i32, i32) {
    %c0_i32 = arith.constant 0 : i32
    %c0_i32_0 = arith.constant 0 : i32
    %c0_i32_1 = arith.constant 0 : i32
    return %c0_i32, %c0_i32_0 : i32, i32
  }
  func.func @transform_11(%arg0: i32) -> (i32, i32, i32) {
    %c0_i32 = arith.constant 0 : i32
    %c0_i32_0 = arith.constant 0 : i32
    %c0_i32_1 = arith.constant 0 : i32
    %c0_i32_2 = arith.constant 0 : i32
    return %c0_i32, %c0_i32_0, %c0_i32_1 : i32, i32, i32
  }
  func.func @transform_12(%arg0: i32) -> (i32, i32) {
    %c0_i32 = arith.constant 0 : i32
    %c0_i32_0 = arith.constant 0 : i32
    %c0_i32_1 = arith.constant 0 : i32
    return %c0_i32, %c0_i32_0 : i32, i32
  }
  func.func @transform_13(%arg0: i32) -> (i32, i32, i32) {
    %c0_i32 = arith.constant 0 : i32
    %c0_i32_0 = arith.constant 0 : i32
    %c0_i32_1 = arith.constant 0 : i32
    %c0_i32_2 = arith.constant 0 : i32
    return %c0_i32, %c0_i32_0, %c0_i32_1 : i32, i32, i32
  }
  func.func @transform_14(%arg0: i32) -> (i32, i32) {
    %c0_i32 = arith.constant 0 : i32
    %c0_i32_0 = arith.constant 0 : i32
    %c0_i32_1 = arith.constant 0 : i32
    return %c0_i32, %c0_i32_0 : i32, i32
  }
  func.func @transform_15(%arg0: i32) -> (i32, i32, i32) {
    %c0_i32 = arith.constant 0 : i32
    %c0_i32_0 = arith.constant 0 : i32
    %c0_i32_1 = arith.constant 0 : i32
    %c0_i32_2 = arith.constant 0 : i32
    return %c0_i32, %c0_i32_0, %c0_i32_1 : i32, i32, i32
  }
  func.func @transform_16(%arg0: i32) -> (i32, i32) {
    %c0_i32 = arith.constant 0 : i32
    %c0_i32_0 = arith.constant 0 : i32
    %c0_i32_1 = arith.constant 0 : i32
    return %c0_i32, %c0_i32_0 : i32, i32
  }
  func.func @transform_17(%arg0: i32) -> (i32, i32, i32) {
    %c0_i32 = arith.constant 0 : i32
    %c0_i32_0 = arith.constant 0 : i32
    %c0_i32_1 = arith.constant 0 : i32
    %c0_i32_2 = arith.constant 0 : i32
    return %c0_i32, %c0_i32_0, %c0_i32_1 : i32, i32, i32
  }
  func.func @transform_18(%arg0: i32) -> (i32, i32) {
    %c0_i32 = arith.constant 0 : i32
    %c0_i32_0 = arith.constant 0 : i32
    %c0_i32_1 = arith.constant 0 : i32
    return %c0_i32, %c0_i32_0 : i32, i32
  }
  func.func @transform_19(%arg0: i32) -> (i32, i32, i32) {
    %c0_i32 = arith.constant 0 : i32
    %c0_i32_0 = arith.constant 0 : i32
    %c0_i32_1 = arith.constant 0 : i32
    %c0_i32_2 = arith.constant 0 : i32
    return %c0_i32, %c0_i32_0, %c0_i32_1 : i32, i32, i32
  }
  func.func @transform_20(%arg0: i32) -> (i32, i32) {
    %c0_i32 = arith.constant 0 : i32
    %c0_i32_0 = arith.constant 0 : i32
    %c0_i32_1 = arith.constant 0 : i32
    return %c0_i32, %c0_i32_0 : i32, i32
  }
  func.func @transform_21(%arg0: i32) -> (i32, i32, i32) {
    %c0_i32 = arith.constant 0 : i32
    %c0_i32_0 = arith.constant 0 : i32
    %c0_i32_1 = arith.constant 0 : i32
    return %arg0, %c0_i32, %c0_i32_0 : i32, i32, i32
  }
}

</mosaic_0001>

<bundles_post_ra>
// kernel: tcn_forward.1
= control target key start
LH: loop header
LB: loop body
LE: loop exit
PB: predicated region body
PF: predicated region fallthrough
CT: control target
= control target key end

     0   :  { %s3287_s0 = inlined_call_operand.vmem [shape: f32[32,4], index: 0, kind: input, shape index: {}]   ;;  %s3288_s1 = inlined_call_operand.hbm [shape: bf16[3,4,16], index: 1, kind: input, shape index: {}]   ;;  %s3289_s2 = inlined_call_operand.hbm [shape: f32[1,16], index: 2, kind: input, shape index: {}]   ;;  %s3290_s3 = inlined_call_operand.vmem [shape: bf16[3,16,16], index: 3, kind: input, shape index: {}]   ;;  %s3291_s4 = inlined_call_operand.hbm [shape: f32[1,16], index: 4, kind: input, shape index: {}]   ;;  %s3292_s5 = inlined_call_operand.hbm [shape: bf16[4,16], index: 5, kind: input, shape index: {}]   ;;  %s3293_s6 = inlined_call_operand.hbm [shape: f32[1,16], index: 6, kind: input, shape index: {}]   ;;  %s3294_s7 = inlined_call_operand.vmem [shape: bf16[3,16,16], index: 7, kind: input, shape index: {}]   ;;  %s3295_s8 = inlined_call_operand.hbm [shape: f32[1,16], index: 8, kind: input, shape index: {}]   ;;  %s3296_s9 = inlined_call_operand.hbm [shape: bf16[3,16,16], index: 9, kind: input, shape index: {}]   ;;  %s3297_s10 = inlined_call_operand.vmem [shape: f32[1,16], index: 10, kind: input, shape index: {}]   ;;  %s3298_s11 = inlined_call_operand.hbm [shape: bf16[3,16,16], index: 11, kind: input, shape index: {}]   ;;  %s3299_s12 = inlined_call_operand.vmem [shape: f32[1,16], index: 12, kind: input, shape index: {}]   ;;  %s3300_s13 = inlined_call_operand.hbm [shape: bf16[3,16,16], index: 13, kind: input, shape index: {}]   ;;  %s3301_s14 = inlined_call_operand.vmem [shape: f32[1,16], index: 14, kind: input, shape index: {}]   ;;  %s3302_s15 = inlined_call_operand.hbm [shape: bf16[3,16,16], index: 15, kind: input, shape index: {}]   ;;  %s3303_s16 = inlined_call_operand.vmem [shape: f32[1,16], index: 16, kind: input, shape index: {}]   ;;  %s3304_s17 = inlined_call_operand.hbm [shape: bf16[3,16,16], index: 17, kind: input, shape index: {}]   ;;  %s3305_s18 = inlined_call_operand.vmem [shape: f32[1,16], index: 18, kind: input, shape index: {}]   ;;  %s3306_s19 = inlined_call_operand.hbm [shape: bf16[16,16,16], index: 19, kind: input, shape index: {}]   ;;  %s3307_s20 = inlined_call_operand.vmem [shape: f32[1,16], index: 20, kind: input, shape index: {}]   ;;  %s3308_s21 = inlined_call_operand.hbm [shape: f32[2,1,16], index: 21, kind: output, shape index: {}]  }
   0x1   :  { %3311 = sst [smem:[#allocation31_spill]] %s3287_s0 }
   0x2   :  { %3312 = sst [smem:[#allocation32_spill]] %s3288_s1 }
   0x3   :  { %3313 = sst [smem:[#allocation33_spill]] %s3289_s2 }
   0x4   :  { %3314 = sst [smem:[#allocation34_spill]] %s3290_s3 }
   0x5   :  { %3315 = sst [smem:[#allocation35_spill]] %s3291_s4 }
   0x6   :  { %3316 = sst [smem:[#allocation36_spill]] %s3292_s5 }
   0x7   :  { %3317 = sst [smem:[#allocation37_spill]] %s3308_s21 }
   0x8   :  { %26 = vsyncpa [#allocation3], 0 }
   0x9   :  { %27 = vsyncpa [#allocation6], 0 }
   0xa   :  { %28 = vsyncpa [#allocation9], 0 }
   0xb   :  { %29 = vsyncpa [#allocation12], 0 }
   0xc   :  { %30 = vsyncpa [#allocation15], 0 }
   0xd   :  { %31 = vsyncpa [#allocation18], 0 }
   0xe   :  { %32 = vsyncpa [#allocation21], 0  ;;  %s3318_s26 = sld [smem:[#allocation33_spill]] }
  0x14   :  { %s54_s27 = sshll.u32 %s3318_s26, 4  ;;  %s55_s27 = int_to_ptr.hbm [resolvable:$true] %s54_s27 }
  0x15   :  { %33 = vsyncpa [#allocation4], 0  ;;  %s2747_s3 = smov [#allocation5]   ;;  %s3319_s4 = sld [smem:[#allocation36_spill]] }
  0x16   :  { %s56_s28 = sshll.u32 %s2747_s3, 4  ;;  %s2748_s5 = smov [#allocation8]   ;;  %s57_s28 = int_to_ptr.vmem [resolvable:$true] %s56_s28 }
  0x17   :  { %59 = dma.hbm_to_vmem [thread:$0]  %s55_s27, 16, %s57_s28, [#allocation6]  }
  0x18   :  { %s80_s22 = sshll.u32 %s2748_s5, 4  ;;  %s102_s24 = sshll.u32 %s3295_s8, 4  ;;  %s81_s22 = int_to_ptr.vmem [resolvable:$true] %s80_s22  ;;  %s103_s24 = int_to_ptr.hbm [resolvable:$true] %s102_s24 }
  0x19   :  { %s2749_s2 = smov [#allocation11]   ;;  %s127_s21 = sshll.u32 %s3298_s11, 4  ;;  %s128_s21 = int_to_ptr.hbm [resolvable:$true] %s127_s21 }
  0x1a   :  { %s104_s25 = sshll.u32 %s2749_s2, 4  ;;  %s2750_s27 = smov [#allocation14]   ;;  %s105_s25 = int_to_ptr.vmem [resolvable:$true] %s104_s25 }
  0x1b   :  { %s78_s30 = sshll.u32 %s3319_s4, 4  ;;  %s129_s28 = sshll.u32 %s2750_s27, 4  ;;  %s79_s30 = int_to_ptr.hbm [resolvable:$true] %s78_s30  ;;  %s130_s28 = int_to_ptr.vmem [resolvable:$true] %s129_s28 }
  0x1c   :  { %83 = dma.hbm_to_vmem [thread:$0]  %s79_s30, 32, %s81_s22, [#allocation9]  }
  0x1d   :  { %107 = dma.hbm_to_vmem [thread:$0]  %s103_s24, 16, %s105_s25, [#allocation12]  }
  0x1e   :  { %s157_s4 = sshll.u32 %s3302_s15, 4  ;;  %s2751_s8 = smov 64   ;;  %s158_s4 = int_to_ptr.hbm [resolvable:$true] %s157_s4 }
  0x1f   :  { %s2752_s5 = smov 4   ;;  %s3320_s23 = sld [smem:[#allocation32_spill]] }
  0x20   :  { %135 = dma.hbm_to_vmem [thread:$0]  %s128_s21, 384, %s130_s28, [#allocation15], %s2751_s8, %s2751_s8, %s2752_s5  }
  0x21   :  { %s2753_s1 = smov [#allocation17]   ;;  %s2754_s15 = smov [#allocation2]  }
  0x22   :  { %s159_s24 = sshll.u32 %s2753_s1, 4  ;;  %s42_s2 = sshll.u32 %s2754_s15, 4  ;;  %s160_s24 = int_to_ptr.vmem [resolvable:$true] %s159_s24  ;;  %s43_s2 = int_to_ptr.vmem [resolvable:$true] %s42_s2 }
  0x23   :  { %165 = dma.hbm_to_vmem [thread:$0]  %s158_s4, 384, %s160_s24, [#allocation18], %s2751_s8, %s2751_s8, %s2752_s5  }
  0x24   :  { %s2755_s25 = smov 32   ;;  %s2756_s26 = smov 2  }
  0x25   :  { %s40_s11 = sshll.u32 %s3320_s23, 4  ;;  %s3321_s27 = sld [smem:[#allocation35_spill]]  ;;  %s41_s11 = int_to_ptr.hbm [resolvable:$true] %s40_s11 }
  0x26   :  { %48 = dma.hbm_to_vmem [thread:$0]  %s41_s11, 96, %s43_s2, [#allocation3], %s2755_s25, %s2755_s25, %s2756_s26  }
  0x27   :  { %s2757_s29 = smov [#allocation7]   ;;  %s89_s23 = sshll.u32 %s3293_s6, 4  ;;  %s90_s23 = int_to_ptr.hbm [resolvable:$true] %s89_s23 }
  0x28   :  { %s69_s0 = sshll.u32 %s2757_s29, 4  ;;  %s2758_s4 = smov [#allocation10]   ;;  %s70_s0 = int_to_ptr.vmem [resolvable:$true] %s69_s0 }
  0x29   :  { %s91_s1 = sshll.u32 %s2758_s4, 4  ;;  %s112_s11 = sshll.u32 %s3296_s9, 4  ;;  %s92_s1 = int_to_ptr.vmem [resolvable:$true] %s91_s1  ;;  %s113_s11 = int_to_ptr.hbm [resolvable:$true] %s112_s11 }
  0x2a   :  { %94 = dma.hbm_to_vmem [thread:$0]  %s90_s23, 16, %s92_s1, [#allocation9]  }
  0x2b   :  { %s67_s28 = sshll.u32 %s3321_s27, 4  ;;  %s142_s26 = sshll.u32 %s3300_s13, 4  ;;  %s68_s28 = int_to_ptr.hbm [resolvable:$true] %s67_s28  ;;  %s143_s26 = int_to_ptr.hbm [resolvable:$true] %s142_s26 }
  0x2c   :  { %72 = dma.hbm_to_vmem [thread:$0]  %s68_s28, 16, %s70_s0, [#allocation6]  }
  0x2d   :  { %s2759_s3 = smov [#allocation13]   ;;  %s2760_s6 = smov [#allocation16]  }
  0x2e   :  { %s114_s21 = sshll.u32 %s2759_s3, 4  ;;  %s144_s27 = sshll.u32 %s2760_s6, 4  ;;  %s115_s21 = int_to_ptr.vmem [resolvable:$true] %s114_s21  ;;  %s145_s27 = int_to_ptr.vmem [resolvable:$true] %s144_s27 }
  0x2f   :  { %120 = dma.hbm_to_vmem [thread:$0]  %s113_s11, 384, %s115_s21, [#allocation12], %s2751_s8, %s2751_s8, %s2752_s5  }
  0x30   :  { %s172_s9 = sshll.u32 %s3304_s17, 4  ;;  %s187_s30 = sshll.u32 %s3306_s19, 4  ;;  %s173_s9 = int_to_ptr.hbm [resolvable:$true] %s172_s9  ;;  %s188_s30 = int_to_ptr.hbm [resolvable:$true] %s187_s30 }
  0x31   :  { %150 = dma.hbm_to_vmem [thread:$0]  %s143_s26, 384, %s145_s27, [#allocation15], %s2751_s8, %s2751_s8, %s2752_s5  }
  0x32   :  { %s2761_s22 = smov [#allocation19]   ;;  %s2762_s4 = smov [#allocation20]  }
  0x33   :  { %s174_s23 = sshll.u32 %s2761_s22, 4  ;;  %s189_s17 = sshll.u32 %s2762_s4, 4  ;;  %s175_s23 = int_to_ptr.vmem [resolvable:$true] %s174_s23  ;;  %s190_s17 = int_to_ptr.vmem [resolvable:$true] %s189_s17 }
  0x34   :  { %180 = dma.hbm_to_vmem [thread:$0]  %s173_s9, 384, %s175_s23, [#allocation18], %s2751_s8, %s2751_s8, %s2752_s5  }
  0x35   :  { %195 = dma.hbm_to_vmem [thread:$0]  %s188_s30, 2048, %s190_s17, [#allocation21], %s2751_s8, %s2751_s8, %s2752_s5  }
  0x36   :  { %2731 = dma.done.wait [#allocation3], 96  }
  0x37   :  { %2732 = vsyncadd [#allocation3], 4294967200 }
  0x38   :  { %2733 = dma.done.wait [#allocation6], 32  }
  0x39   :  { %2734 = vsyncadd [#allocation6], 4294967264 }
  0x3a   :  { %2735 = dma.done.wait [#allocation9], 48  }
  0x3b   :  { %2736 = vsyncadd [#allocation9], 4294967248 }
  0x3c   :  { %2737 = dma.done.wait [#allocation12], 400  }
  0x3d   :  { %2738 = vsyncadd [#allocation12], 4294966896 }
  0x3e   :  { %2739 = dma.done.wait [#allocation15], 768  }
  0x3f   :  { %2740 = vsyncadd [#allocation15], 4294966528 }
  0x40   :  { %2741 = dma.done.wait [#allocation18], 768  }
  0x41   :  { %2742 = vsyncadd [#allocation18], 4294966528 }
  0x42   :  { %2743 = dma.done.wait [#allocation21], 2048  }
  0x43   :  { %2744 = vsyncadd [#allocation21], 4294965248  ;;  %vm254_vm0 = vcmask 1041408   ;;  %vm291_vm1 = vcmask 31744   ;;  %v2763_v0 = vmov 0.0   ;;  %s3322_s5 = sld [smem:[#allocation31_spill]] }
  0x44   :  { %v2932_v1 = vrot.slane %v2763_v0, 7  ;;  %v2935_v2 = vrot.slane %v2763_v0, 6  ;;  %v351_v3 = vld [vmem:[#allocation2 + $0x4] sm:$0x3]  ;;  %v290_v4 = vld [vmem:[#allocation2 + $0x2] sm:$0x3] }
  0x45   :  { %v272_v5 = vld [vmem:[#allocation2] sm:$0x3]  ;;  %v359_v6 = vsel %vm254_vm0, %v351_v3, 0  ;;  %v299_v7 = vsel %vm254_vm0, %v290_v4, 0  ;;  %vm273_vm2 = vcmask 1040384   ;;  %s3323_s2 = sld [smem:[#allocation34_spill]] }
  0x46   :  { %v327_v8 = vsel %vm254_vm0, %v272_v5, 0  ;;  %368 = vmatpush.bf16.msra.mxu2 %v359_v6  ;;  %308 = vmatpush.bf16.msra.mxu0 %v299_v7  ;;  %v548_v17 = vld [vmem:[#allocation8] sm:$0x3]  ;;  %v2402_v44 = vld [vmem:[#allocation5] ss:$0 sm:$0xff]  ;;  %vm439_vm3 = vcmask 130048  }
  0x47   :  { %336 = vmatpush.bf16.msra.mxu1 %v327_v8  ;;  %v554_v24 = vsel %vm254_vm0, %v548_v17, 0  ;;  %vm585_vm4 = vcmask 1043456   ;;  %vm1778_vm5 = vcmask 122880   ;;  %s2765_s26 = smov 16   ;;  %s2766_s3 = smov 1  }
  0x49   :  { %v247_v9 = vld [vmem:[%s3322_s5] sm:$0xff]  ;;  %v248_v10 = vld [vmem:[%s3322_s5 + $0x8] sm:$0xff]  ;;  %v249_v25 = vld [vmem:[%s3322_s5 + $0x10] sm:$0xff] }
  0x4a   :  { %v256_v11 = vrot.slane %v247_v9, 6  ;;  %v258_v12 = vrot.slane %v248_v10, 6  ;;  %v275_v13 = vrot.slane %v247_v9, 7  ;;  %v277_v14 = vrot.slane %v248_v10, 7  ;;  %563 = vmatpush.bf16.msrb.mxu2 %v554_v24  ;;  %v250_v26 = vld [vmem:[%s3322_s5 + $0x18] sm:$0xff] }
  0x4b   :  { %v2347_v15 = vld [vmem:[%s3323_s2] sm:$0xff]  ;;  %v348_v16 = vpack.c.bf16 %v248_v10, %v247_v9  ;;  %v264_v27 = vrot.slane %v249_v25, 6  ;;  %v266_v28 = vrot.slane %v250_v26, 6  ;;  %v281_v29 = vrot.slane %v249_v25, 7  ;;  %v2349_v38 = vld [vmem:[%s3323_s2 + $0x10] sm:$0xff]  ;;  %v2348_v39 = vld [vmem:[%s3323_s2 + $0x8] sm:$0xff] }
  0x4c   :  { %v276_v18 = vsel %vm273_vm2, %v2932_v1, %v275_v13  ;;  %v278_v19 = vsel %vm273_vm2, %v275_v13, %v277_v14  ;;  %v257_v20 = vsel %vm254_vm0, %v2935_v2, %v256_v11  ;;  %v259_v21 = vsel %vm254_vm0, %v256_v11, %v258_v12  ;;  %484 = vmatpush.bf16.msrb.mxu0 %v2347_v15  ;;  %s3324_s2 = sld [smem:[#allocation37_spill]] }
  0x4d   :  { %2125 = vmatmul.msk.bf16.vlgmr.msra.gmra.mxu2 %vm291_vm1, %v348_v16  ;;  %v287_v22 = vpack.c.bf16 %v278_v19, %v276_v18  ;;  %v270_v23 = vpack.c.bf16 %v259_v21, %v257_v20  ;;  %v283_v30 = vrot.slane %v250_v26, 7  ;;  %v282_v31 = vsel %vm273_vm2, %v2932_v1, %v281_v29  ;;  %520 = vmatpush.bf16.msrb.mxu1 %v2349_v38  ;;  %v2403_v38 = vld [vmem:[#allocation10] ss:$0 sm:$0xff] }
  0x4e   :  { %v265_v33 = vsel %vm254_vm0, %v2935_v2, %v264_v27  ;;  %v267_v34 = vsel %vm254_vm0, %v264_v27, %v266_v28  ;;  %v349_v35 = vpack.c.bf16 %v250_v26, %v249_v25  ;;  %453 = vmatpush.bf16.msra.mxu3 %v2348_v39 }
  0x4f   :  { %2121 = vmatmul.msk.bf16.vlgmr.msra.gmra.mxu0 %vm291_vm1, %v287_v22  ;;  %2123 = vmatmul.msk.bf16.vlgmr.msra.gmra.mxu1 %vm291_vm1, %v270_v23  ;;  %v284_v32 = vsel %vm273_vm2, %v281_v29, %v283_v30  ;;  %v271_v37 = vpack.c.bf16 %v267_v34, %v265_v33  ;;  %v2350_v30 = vld [vmem:[%s3294_s7] sm:$0xff] }
  0x50   :  { %v288_v36 = vpack.c.bf16 %v284_v32, %v282_v31  ;;  %v2352_v31 = vld [vmem:[%s3294_s7 + $0x10] sm:$0xff]  ;;  %672 = vmatpush.bf16.msra.mxu0 %v2350_v30 }
  0x51   :  { %708 = vmatpush.bf16.msra.mxu1 %v2352_v31 }
  0x52   :  { %s2102_s25 = sshll.u32 %s3324_s2, 4  ;;  %s2103_s25 = int_to_ptr.hbm [resolvable:$true] %s2102_s25 }
  0x5d   :  { %2126 = vmatmul.msk.bf16.gmra.mxu2 %vm291_vm1, %v349_v35 }
  0x5f   :  { %2122 = vmatmul.msk.bf16.gmra.mxu0 %vm291_vm1, %v288_v36  ;;  %2124 = vmatmul.msk.bf16.gmra.mxu1 %vm291_vm1, %v271_v37  ;;  %v2404_v37 = vld [vmem:[#allocation7] ss:$0 sm:$0xff] }
  0x6d   :  { %2149 = vmatmul.msk.bf16.vlgmr.msrb.gmra.mxu2 %vm291_vm1, %v348_v16 }
  0x7d   :  { %2150 = vmatmul.msk.bf16.gmra.mxu2 %vm291_vm1, %v349_v35 }
  0xcc   :  { %v310_v40 = vpop.f32.mrf.mxu0  ;;  %v338_v41 = vpop.f32.mrf.mxu1 }
  0xcd   :  { %v339_v42 = vadd.f32 %v338_v41, %v310_v40 }
  0xd0   :  { %v370_v43 = vpop.f32.mrf.mxu2 }
  0xd1   :  { %v380_v45 = vadd.f32 %v370_v43, %v339_v42 }
  0xd3   :  { %v388_v46 = vadd.f32 %v2402_v44, %v380_v45 }
  0xd4   :  { %v312_v47 = vpop.f32.mrf.mxu0  ;;  %v340_v48 = vpop.f32.mrf.mxu1 }
  0xd5   :  { %v341_v49 = vadd.f32 %v340_v48, %v312_v47  ;;  %v392_v50 = vmax.f32 %v388_v46, 0.0 }
  0xd7   :  { %v416_v54 = vrot.slane %v392_v50, 7  ;;  %v398_v57 = vrot.slane %v392_v50, 6 }
  0xd8   :  { %v372_v51 = vpop.f32.mrf.mxu2 }
  0xd9   :  { %v381_v52 = vadd.f32 %v372_v51, %v341_v49  ;;  %v417_v3 = vsel %vm273_vm2, %v2932_v1, %v416_v54  ;;  %v399_v6 = vsel %vm254_vm0, %v2935_v2, %v398_v57  ;;  %v2354_v49 = vld [vmem:[#allocation13 + $0x8] sm:$0xff] }
  0xda   :  { %792 = vmatpush.bf16.msra.mxu2 %v2354_v49 }
  0xdb   :  { %v389_v53 = vadd.f32 %v2402_v44, %v381_v52 }
  0xdc   :  { %v315_v55 = vpop.f32.mrf.mxu0  ;;  %v343_v56 = vpop.f32.mrf.mxu1 }
  0xdd   :  { %v393_v58 = vmax.f32 %v389_v53, 0.0  ;;  %v344_v59 = vadd.f32 %v343_v56, %v315_v55 }
  0xdf   :  { %v400_v60 = vrot.slane %v393_v58, 6  ;;  %v418_v61 = vrot.slane %v393_v58, 7  ;;  %v496_v62 = vpack.c.bf16 %v393_v58, %v392_v50  ;;  %v2353_v50 = vld [vmem:[#allocation13] sm:$0xff] }
  0xe0   :  { %v375_v63 = vpop.f32.mrf.mxu2 }
  0xe1   :  { %v382_v4 = vadd.f32 %v375_v63, %v344_v59  ;;  %2147 = vmatmul.msk.bf16.vlgmr.msrb.gmra.mxu1 %vm439_vm3, %v496_v62  ;;  %v419_v5 = vsel %vm273_vm2, %v416_v54, %v418_v61  ;;  %v401_v7 = vsel %vm254_vm0, %v398_v57, %v400_v60 }
  0xe2   :  { %v428_v8 = vpack.c.bf16 %v419_v5, %v417_v3  ;;  %v412_v9 = vpack.c.bf16 %v401_v7, %v399_v6  ;;  %v3016_v5 = vrot.slane %v2763_v0, 4 }
  0xe3   :  { %v390_v10 = vadd.f32 %v2402_v44, %v382_v4 }
  0xe4   :  { %2133 = vmatmul.msk.bf16.vlgmr.msra.gmra.mxu3 %vm439_vm3, %v428_v8  ;;  %2139 = vmatmul.msk.bf16.vlgmr.msrb.gmra.mxu0 %vm439_vm3, %v412_v9  ;;  %v317_v11 = vpop.f32.mrf.mxu0  ;;  %v345_v12 = vpop.f32.mrf.mxu1 }
  0xe5   :  { %v346_v13 = vadd.f32 %v345_v12, %v317_v11  ;;  %v394_v14 = vmax.f32 %v390_v10, 0.0 }
  0xe7   :  { %v422_v17 = vrot.slane %v394_v14, 7  ;;  %v406_v18 = vrot.slane %v394_v14, 6 }
  0xe8   :  { %v377_v15 = vpop.f32.mrf.mxu2 }
  0xe9   :  { %v383_v16 = vadd.f32 %v377_v15, %v346_v13  ;;  %v423_v21 = vsel %vm273_vm2, %v2932_v1, %v422_v17  ;;  %v407_v24 = vsel %vm254_vm0, %v2935_v2, %v406_v18  ;;  %v2351_v1 = vld [vmem:[%s3294_s7 + $0x8] sm:$0xff] }
  0xea   :  { %641 = vmatpush.bf16.msrb.mxu3 %v2351_v1 }
  0xeb   :  { %v391_v19 = vadd.f32 %v2402_v44, %v383_v16 }
  0xed   :  { %v395_v20 = vmax.f32 %v391_v19, 0.0 }
  0xee   :  { %823 = vmatpush.bf16.msra.mxu3 %v2353_v50 }
  0xef   :  { %v408_v22 = vrot.slane %v395_v20, 6  ;;  %v424_v23 = vrot.slane %v395_v20, 7  ;;  %v497_v25 = vpack.c.bf16 %v395_v20, %v394_v14 }
  0xf0   :  { %v565_v34 = vpop.f32.mrf.mxu2 }
  0xf1   :  { %v425_v26 = vsel %vm273_vm2, %v422_v17, %v424_v23  ;;  %v409_v27 = vsel %vm254_vm0, %v406_v18, %v408_v22  ;;  %2148 = vmatmul.msk.bf16.gmra.mxu1 %vm439_vm3, %v497_v25  ;;  %v566_v42 = vadd.f32 %v2403_v38, %v565_v34 }
  0xf2   :  { %v429_v28 = vpack.c.bf16 %v425_v26, %v423_v21  ;;  %v413_v29 = vpack.c.bf16 %v409_v27, %v407_v24 }
  0xf4   :  { %2134 = vmatmul.msk.bf16.gmra.mxu3 %vm439_vm3, %v429_v28  ;;  %2140 = vmatmul.msk.bf16.gmra.mxu0 %vm439_vm3, %v413_v29 }
  0xf8   :  { %v567_v45 = vpop.f32.mrf.mxu2 }
  0xf9   :  { %v568_v56 = vadd.f32 %v2403_v38, %v567_v45 }
 0x100   :  { %v570_v59 = vpop.f32.mrf.mxu2 }
 0x101   :  { %v571_v6 = vadd.f32 %v2403_v38, %v570_v59 }
 0x108   :  { %v572_v23 = vpop.f32.mrf.mxu2 }
 0x109   :  { %v573_v27 = vadd.f32 %v2403_v38, %v572_v23 }
 0x15e   :  { %v522_v33 = vpop.f32.mrf.mxu1 }
 0x161   :  { %v486_v32 = vpop.f32.mrf.mxu0 }
 0x166   :  { %v524_v43 = vpop.f32.mrf.mxu1 }
 0x167   :  { %v455_v35 = vpop.f32.mrf.mxu3 }
 0x168   :  { %v487_v36 = vadd.f32 %v486_v32, %v455_v35 }
 0x169   :  { %v488_v40 = vpop.f32.mrf.mxu0 }
 0x16a   :  { %v532_v39 = vadd.f32 %v522_v33, %v487_v36 }
 0x16c   :  { %v540_v41 = vadd.f32 %v2404_v37, %v532_v39 }
 0x16e   :  { %v544_v44 = vmax.f32 %v540_v41, 0.0  ;;  %v527_v55 = vpop.f32.mrf.mxu1  ;;  %v2355_v41 = vld [vmem:[#allocation13 + $0x10] sm:$0xff] }
 0x16f   :  { %v457_v46 = vpop.f32.mrf.mxu3  ;;  %859 = vmatpush.bf16.msrb.mxu0 %v2355_v41 }
 0x170   :  { %v489_v47 = vadd.f32 %v488_v40, %v457_v46  ;;  %v575_v48 = vadd.f32 %v566_v42, %v544_v44  ;;  %v2405_v46 = vld [vmem:[#allocation11] ss:$0 sm:$0xff] }
 0x171   :  { %v491_v52 = vpop.f32.mrf.mxu0 }
 0x172   :  { %v533_v51 = vadd.f32 %v524_v43, %v489_v47  ;;  %v3009_v54 = vmax.f32 %v575_v48, 0.0 }
 0x174   :  { %v541_v53 = vadd.f32 %v2404_v37, %v533_v51  ;;  %v605_v62 = vrot.slane %v3009_v54, 6  ;;  %v587_v63 = vrot.slane %v3009_v54, 4  ;;  %v2356_v51 = vld [vmem:[#allocation14] sm:$0xff] }
 0x175   :  { %970 = vmatpush.bf16.msrb.mxu2 %v2356_v51  ;;  %v2361_v51 = vld [vmem:[#allocation16 + $0x10] sm:$0xff] }
 0x176   :  { %v545_v57 = vmax.f32 %v541_v53, 0.0  ;;  %v606_v12 = vsel %vm254_vm0, %v2935_v2, %v605_v62  ;;  %v588_v15 = vsel %vm585_vm4, %v3016_v5, %v587_v63  ;;  %v529_v18 = vpop.f32.mrf.mxu1 }
 0x177   :  { %v460_v58 = vpop.f32.mrf.mxu3 }
 0x178   :  { %v576_v60 = vadd.f32 %v568_v56, %v545_v57  ;;  %v492_v61 = vadd.f32 %v491_v52, %v460_v58 }
 0x179   :  { %v493_v11 = vpop.f32.mrf.mxu0 }
 0x17a   :  { %v3013_v3 = vmax.f32 %v576_v60, 0.0  ;;  %v534_v4 = vadd.f32 %v527_v55, %v492_v61 }
 0x17c   :  { %v589_v7 = vrot.slane %v3013_v3, 4  ;;  %v542_v8 = vadd.f32 %v2404_v37, %v534_v4  ;;  %v684_v9 = vpack.c.bf16 %v3013_v3, %v3009_v54  ;;  %v607_v10 = vrot.slane %v3013_v3, 6 }
 0x17e   :  { %v546_v13 = vmax.f32 %v542_v8, 0.0  ;;  %2171 = vmatmul.msk.bf16.vlgmr.msra.gmra.mxu1 %vm439_vm3, %v684_v9  ;;  %v608_v14 = vsel %vm254_vm0, %v605_v62, %v607_v10  ;;  %v590_v16 = vsel %vm585_vm4, %v587_v63, %v589_v7 }
 0x17f   :  { %v462_v17 = vpop.f32.mrf.mxu3  ;;  %v617_v19 = vpack.c.bf16 %v608_v14, %v606_v12  ;;  %v601_v20 = vpack.c.bf16 %v590_v16, %v588_v15 }
 0x180   :  { %v577_v21 = vadd.f32 %v571_v6, %v546_v13  ;;  %v494_v22 = vadd.f32 %v493_v11, %v462_v17 }
 0x181   :  { %2157 = vmatmul.msk.bf16.vlgmr.msrb.gmra.mxu3 %vm439_vm3, %v617_v19  ;;  %2163 = vmatmul.msk.bf16.vlgmr.msra.gmra.mxu0 %vm439_vm3, %v601_v20 }
 0x182   :  { %v535_v24 = vadd.f32 %v529_v18, %v494_v22  ;;  %v3031_v25 = vmax.f32 %v577_v21, 0.0 }
 0x184   :  { %v543_v26 = vadd.f32 %v2404_v37, %v535_v24  ;;  %v611_v29 = vrot.slane %v3031_v25, 6  ;;  %v595_v30 = vrot.slane %v3031_v25, 4 }
 0x186   :  { %v547_v28 = vmax.f32 %v543_v26, 0.0  ;;  %v612_v32 = vsel %vm254_vm0, %v2935_v2, %v611_v29  ;;  %v596_v34 = vsel %vm585_vm4, %v3016_v5, %v595_v30 }
 0x188   :  { %v578_v1 = vadd.f32 %v573_v27, %v547_v28 }
 0x18a   :  { %v3035_v31 = vmax.f32 %v578_v1, 0.0 }
 0x18c   :  { %v613_v33 = vrot.slane %v3035_v31, 6  ;;  %v597_v35 = vrot.slane %v3035_v31, 4  ;;  %v685_v36 = vpack.c.bf16 %v3035_v31, %v3031_v25 }
 0x18e   :  { %v614_v37 = vsel %vm254_vm0, %v611_v29, %v613_v33  ;;  %v598_v38 = vsel %vm585_vm4, %v595_v30, %v597_v35  ;;  %2172 = vmatmul.msk.bf16.gmra.mxu1 %vm439_vm3, %v685_v36 }
 0x18f   :  { %v618_v39 = vpack.c.bf16 %v614_v37, %v612_v32  ;;  %v602_v40 = vpack.c.bf16 %v598_v38, %v596_v34  ;;  %v2358_v37 = vld [vmem:[#allocation14 + $0x10] sm:$0xff] }
 0x190   :  { %1006 = vmatpush.bf16.msrb.mxu3 %v2358_v37 }
 0x191   :  { %2158 = vmatmul.msk.bf16.gmra.mxu3 %vm439_vm3, %v618_v39  ;;  %2164 = vmatmul.msk.bf16.gmra.mxu0 %vm439_vm3, %v602_v40 }
 0x1fb   :  { %v710_v43 = vpop.f32.mrf.mxu1 }
 0x1fe   :  { %v674_v42 = vpop.f32.mrf.mxu0 }
 0x203   :  { %v712_v49 = vpop.f32.mrf.mxu1 }
 0x204   :  { %v643_v44 = vpop.f32.mrf.mxu3 }
 0x205   :  { %v675_v45 = vadd.f32 %v674_v42, %v643_v44  ;;  %v2406_v42 = vld [vmem:[%s3297_s10] ss:$0 sm:$0xff] }
 0x206   :  { %v676_v48 = vpop.f32.mrf.mxu0 }
 0x207   :  { %v720_v47 = vadd.f32 %v710_v43, %v675_v45 }
 0x209   :  { %v728_v50 = vadd.f32 %v2405_v46, %v720_v47 }
 0x20b   :  { %v732_v55 = vmax.f32 %v728_v50, 0.0  ;;  %v715_v60 = vpop.f32.mrf.mxu1 }
 0x20c   :  { %v645_v52 = vpop.f32.mrf.mxu3 }
 0x20d   :  { %v677_v53 = vadd.f32 %v676_v48, %v645_v52  ;;  %v756_v59 = vrot.slane %v732_v55, 6  ;;  %v738_v61 = vrot.slane %v732_v55, 4  ;;  %v2360_v52 = vld [vmem:[#allocation16 + $0x8] sm:$0xff] }
 0x20e   :  { %v679_v57 = vpop.f32.mrf.mxu0  ;;  %1078 = vmatpush.bf16.msra.mxu0 %v2360_v52 }
 0x20f   :  { %v721_v56 = vadd.f32 %v712_v49, %v677_v53  ;;  %v757_v9 = vsel %vm254_vm0, %v2935_v2, %v756_v59  ;;  %v739_v12 = vsel %vm585_vm4, %v3016_v5, %v738_v61  ;;  %v2359_v53 = vld [vmem:[#allocation16] sm:$0xff] }
 0x211   :  { %v729_v58 = vadd.f32 %v2405_v46, %v721_v56 }
 0x213   :  { %v733_v62 = vmax.f32 %v729_v58, 0.0  ;;  %v717_v20 = vpop.f32.mrf.mxu1 }
 0x214   :  { %v648_v63 = vpop.f32.mrf.mxu3 }
 0x215   :  { %v740_v4 = vrot.slane %v733_v62, 4  ;;  %v758_v6 = vrot.slane %v733_v62, 6  ;;  %v835_v7 = vpack.c.bf16 %v733_v62, %v732_v55  ;;  %v680_v8 = vadd.f32 %v679_v57, %v648_v63 }
 0x216   :  { %v681_v17 = vpop.f32.mrf.mxu0 }
 0x217   :  { %v722_v10 = vadd.f32 %v715_v60, %v680_v8  ;;  %2189 = vmatmul.msk.bf16.vlgmr.msrb.gmra.mxu0 %vm439_vm3, %v835_v7  ;;  %v759_v11 = vsel %vm254_vm0, %v756_v59, %v758_v6  ;;  %v741_v13 = vsel %vm585_vm4, %v738_v61, %v740_v4 }
 0x218   :  { %v768_v14 = vpack.c.bf16 %v759_v11, %v757_v9  ;;  %v752_v15 = vpack.c.bf16 %v741_v13, %v739_v12 }
 0x219   :  { %v730_v16 = vadd.f32 %v2405_v46, %v722_v10 }
 0x21a   :  { %2177 = vmatmul.msk.bf16.vlgmr.msra.gmra.mxu2 %vm439_vm3, %v768_v14  ;;  %2183 = vmatmul.msk.bf16.vlgmr.msra.gmra.mxu3 %vm439_vm3, %v752_v15 }
 0x21b   :  { %v734_v18 = vmax.f32 %v730_v16, 0.0  ;;  %1145 = vmatpush.bf16.msra.mxu2 %v2361_v51 }
 0x21c   :  { %v650_v19 = vpop.f32.mrf.mxu3 }
 0x21d   :  { %v682_v21 = vadd.f32 %v681_v17, %v650_v19  ;;  %v762_v23 = vrot.slane %v734_v18, 6  ;;  %v746_v24 = vrot.slane %v734_v18, 4 }
 0x21f   :  { %v723_v22 = vadd.f32 %v717_v20, %v682_v21  ;;  %v763_v28 = vsel %vm254_vm0, %v2935_v2, %v762_v23  ;;  %v747_v30 = vsel %vm585_vm4, %v3016_v5, %v746_v24  ;;  %v2357_v2 = vld [vmem:[#allocation14 + $0x8] sm:$0xff] }
 0x220   :  { %939 = vmatpush.bf16.msrb.mxu1 %v2357_v2 }
 0x221   :  { %v731_v26 = vadd.f32 %v2405_v46, %v723_v22 }
 0x223   :  { %v735_v27 = vmax.f32 %v731_v26, 0.0 }
 0x224   :  { %1109 = vmatpush.bf16.msra.mxu1 %v2359_v53 }
 0x225   :  { %v748_v29 = vrot.slane %v735_v27, 4  ;;  %v764_v1 = vrot.slane %v735_v27, 6  ;;  %v836_v32 = vpack.c.bf16 %v735_v27, %v734_v18 }
 0x227   :  { %v765_v33 = vsel %vm254_vm0, %v762_v23, %v764_v1  ;;  %v749_v34 = vsel %vm585_vm4, %v746_v24, %v748_v29  ;;  %2190 = vmatmul.msk.bf16.gmra.mxu0 %vm439_vm3, %v836_v32 }
 0x228   :  { %v769_v35 = vpack.c.bf16 %v765_v33, %v763_v28  ;;  %v753_v36 = vpack.c.bf16 %v749_v34, %v747_v30  ;;  %v2407_v34 = vld [vmem:[%s3299_s12] ss:$0 sm:$0xff] }
 0x22a   :  { %2178 = vmatmul.msk.bf16.gmra.mxu2 %vm439_vm3, %v769_v35  ;;  %2184 = vmatmul.msk.bf16.gmra.mxu3 %vm439_vm3, %v753_v36 }
 0x294   :  { %v861_v38 = vpop.f32.mrf.mxu0 }
 0x29c   :  { %v863_v45 = vpop.f32.mrf.mxu0 }
 0x29d   :  { %v794_v39 = vpop.f32.mrf.mxu2  ;;  %v825_v40 = vpop.f32.mrf.mxu3 }
 0x29e   :  { %v826_v41 = vadd.f32 %v825_v40, %v794_v39 }
 0x2a0   :  { %v871_v43 = vadd.f32 %v861_v38, %v826_v41 }
 0x2a2   :  { %v879_v44 = vadd.f32 %v2406_v42, %v871_v43 }
 0x2a4   :  { %v883_v46 = vmax.f32 %v879_v44, 0.0  ;;  %v866_v60 = vpop.f32.mrf.mxu0 }
 0x2a5   :  { %v796_v47 = vpop.f32.mrf.mxu2  ;;  %v827_v48 = vpop.f32.mrf.mxu3 }
 0x2a6   :  { %v887_v49 = vadd.f32 %v883_v46, %v3009_v54  ;;  %v828_v50 = vadd.f32 %v827_v48, %v796_v47 }
 0x2a8   :  { %v3072_v55 = vmax.f32 %v887_v49, 0.0  ;;  %v872_v56 = vadd.f32 %v863_v45, %v828_v50 }
 0x2aa   :  { %v880_v57 = vadd.f32 %v2406_v42, %v872_v56  ;;  %v895_v58 = vpack.c.bf16 %v3072_v55, %v2763_v0  ;;  %v901_v4 = vrot.slane %v3072_v55, 4 }
 0x2ac   :  { %v884_v59 = vmax.f32 %v880_v57, 0.0  ;;  %2201 = vmatmul.msk.bf16.vlgmr.msrb.gmra.mxu2 %vm439_vm3, %v895_v58  ;;  %v902_v12 = vsel %vm585_vm4, %v3016_v5, %v901_v4  ;;  %v868_v18 = vpop.f32.mrf.mxu0 }
 0x2ad   :  { %v799_v61 = vpop.f32.mrf.mxu2  ;;  %v830_v54 = vpop.f32.mrf.mxu3 }
 0x2ae   :  { %v888_v62 = vadd.f32 %v884_v59, %v3013_v3  ;;  %v831_v63 = vadd.f32 %v830_v54, %v799_v61 }
 0x2b0   :  { %v3079_v6 = vmax.f32 %v888_v62, 0.0  ;;  %v873_v7 = vadd.f32 %v866_v60, %v831_v63 }
 0x2b2   :  { %v903_v8 = vrot.slane %v3079_v6, 4  ;;  %v881_v9 = vadd.f32 %v2406_v42, %v873_v7  ;;  %v982_v10 = vpack.c.bf16 %v3079_v6, %v3072_v55 }
 0x2b4   :  { %v885_v11 = vmax.f32 %v881_v9, 0.0  ;;  %2207 = vmatmul.msk.bf16.vlgmr.msrb.gmra.mxu3 %vm439_vm3, %v982_v10  ;;  %v904_v3 = vsel %vm585_vm4, %v901_v4, %v903_v8 }
 0x2b5   :  { %v801_v13 = vpop.f32.mrf.mxu2  ;;  %v832_v14 = vpop.f32.mrf.mxu3  ;;  %v915_v15 = vpack.c.bf16 %v904_v3, %v902_v12 }
 0x2b6   :  { %v889_v16 = vadd.f32 %v885_v11, %v3031_v25  ;;  %v833_v17 = vadd.f32 %v832_v14, %v801_v13 }
 0x2b7   :  { %2195 = vmatmul.msk.bf16.vlgmr.msrb.gmra.mxu1 %vm439_vm3, %v915_v15  ;;  %v2363_v15 = vld [vmem:[#allocation17 + $0x10] sm:$0xff] }
 0x2b8   :  { %v3090_v19 = vmax.f32 %v889_v16, 0.0  ;;  %v874_v20 = vadd.f32 %v868_v18, %v833_v17  ;;  %1210 = vmatpush.bf16.msra.mxu3 %v2363_v15  ;;  %v2362_v16 = vld [vmem:[#allocation17 + $0x8] sm:$0xff] }
 0x2b9   :  { %1241 = vmatpush.bf16.msrb.mxu0 %v2362_v16 }
 0x2ba   :  { %v882_v21 = vadd.f32 %v2406_v42, %v874_v20  ;;  %v896_v22 = vpack.c.bf16 %v3090_v19, %v2763_v0  ;;  %v909_v25 = vrot.slane %v3090_v19, 4 }
 0x2bc   :  { %v886_v23 = vmax.f32 %v882_v21, 0.0  ;;  %2202 = vmatmul.msk.bf16.gmra.mxu2 %vm439_vm3, %v896_v22  ;;  %v910_v29 = vsel %vm585_vm4, %v3016_v5, %v909_v25  ;;  %v2408_v21 = vld [vmem:[%s3301_s14] ss:$0 sm:$0xff] }
 0x2be   :  { %v890_v24 = vadd.f32 %v886_v23, %v3035_v31 }
 0x2c0   :  { %v3096_v26 = vmax.f32 %v890_v24, 0.0 }
 0x2c2   :  { %v983_v27 = vpack.c.bf16 %v3096_v26, %v3090_v19  ;;  %v911_v28 = vrot.slane %v3096_v26, 4 }
 0x2c4   :  { %2208 = vmatmul.msk.bf16.gmra.mxu3 %vm439_vm3, %v983_v27  ;;  %v912_v1 = vsel %vm585_vm4, %v909_v25, %v911_v28  ;;  %v2364_v28 = vld [vmem:[#allocation19 + $0x8] sm:$0xff] }
 0x2c5   :  { %v916_v30 = vpack.c.bf16 %v912_v1, %v910_v29  ;;  %v2365_v29 = vld [vmem:[#allocation19 + $0x10] sm:$0xff]  ;;  %1325 = vmatpush.bf16.msrb.mxu2 %v2364_v28  ;;  %v3181_v28 = vld [vmem:[#allocation20 + $0x40] sm:$0xff] }
 0x2c6   :  { %1294 = vmatpush.bf16.msrb.mxu1 %v2365_v29  ;;  %v3185_v29 = vld [vmem:[#allocation20 + $0x38] sm:$0xff] }
 0x2c7   :  { %2196 = vmatmul.msk.bf16.gmra.mxu1 %vm439_vm3, %v916_v30 }
 0x32f   :  { %v972_v31 = vpop.f32.mrf.mxu2 }
 0x334   :  { %v941_v32 = vpop.f32.mrf.mxu1 }
 0x335   :  { %v973_v33 = vadd.f32 %v972_v31, %v941_v32 }
 0x337   :  { %v1008_v35 = vpop.f32.mrf.mxu3  ;;  %v974_v36 = vpop.f32.mrf.mxu2 }
 0x338   :  { %v1018_v37 = vadd.f32 %v1008_v35, %v973_v33 }
 0x33a   :  { %v1026_v2 = vadd.f32 %v2407_v34, %v1018_v37 }
 0x33c   :  { %v1030_v38 = vmax.f32 %v1026_v2, 0.0  ;;  %v943_v39 = vpop.f32.mrf.mxu1 }
 0x33d   :  { %v975_v40 = vadd.f32 %v974_v36, %v943_v39 }
 0x33e   :  { %v1034_v41 = vpack.c.bf16 %v1030_v38, %v2763_v0  ;;  %v1040_v46 = vrot.slane %v1030_v38, 4 }
 0x33f   :  { %v1010_v42 = vpop.f32.mrf.mxu3  ;;  %v977_v44 = vpop.f32.mrf.mxu2 }
 0x340   :  { %v1019_v43 = vadd.f32 %v1010_v42, %v975_v40  ;;  %2219 = vmatmul.msk.bf16.vlgmr.msra.gmra.mxu1 %vm439_vm3, %v1034_v41  ;;  %v1041_v53 = vsel %vm585_vm4, %v3016_v5, %v1040_v46 }
 0x342   :  { %v1027_v45 = vadd.f32 %v2407_v34, %v1019_v43 }
 0x344   :  { %v1031_v47 = vmax.f32 %v1027_v45, 0.0  ;;  %v946_v48 = vpop.f32.mrf.mxu1 }
 0x345   :  { %v978_v49 = vadd.f32 %v977_v44, %v946_v48 }
 0x346   :  { %v1042_v50 = vrot.slane %v1031_v47, 4  ;;  %v1121_v51 = vpack.c.bf16 %v1031_v47, %v1030_v38 }
 0x347   :  { %v1013_v52 = vpop.f32.mrf.mxu3  ;;  %v979_v60 = vpop.f32.mrf.mxu2 }
 0x348   :  { %v1043_v56 = vsel %vm585_vm4, %v1040_v46, %v1042_v50  ;;  %v1020_v57 = vadd.f32 %v1013_v52, %v978_v49  ;;  %2225 = vmatmul.msk.bf16.vlgmr.msra.gmra.mxu2 %vm439_vm3, %v1121_v51 }
 0x349   :  { %v1054_v58 = vpack.c.bf16 %v1043_v56, %v1041_v53 }
 0x34a   :  { %v1028_v59 = vadd.f32 %v2407_v34, %v1020_v57 }
 0x34b   :  { %2213 = vmatmul.msk.bf16.vlgmr.msra.gmra.mxu0 %vm439_vm3, %v1054_v58 }
 0x34c   :  { %v1032_v61 = vmax.f32 %v1028_v59, 0.0  ;;  %v948_v54 = vpop.f32.mrf.mxu1  ;;  %v2409_v59 = vld [vmem:[%s3303_s16] ss:$0 sm:$0xff] }
 0x34d   :  { %v980_v62 = vadd.f32 %v979_v60, %v948_v54  ;;  %v3158_v54 = vld [vmem:[#allocation20] sm:$0xff] }
 0x34e   :  { %v1035_v63 = vpack.c.bf16 %v1032_v61, %v2763_v0  ;;  %v1048_v9 = vrot.slane %v1032_v61, 4  ;;  %1407 = vmatpush.bf16.msrb.mxu3 %v3158_v54 }
 0x34f   :  { %v1015_v4 = vpop.f32.mrf.mxu3 }
 0x350   :  { %v1021_v7 = vadd.f32 %v1015_v4, %v980_v62  ;;  %2220 = vmatmul.msk.bf16.gmra.mxu1 %vm439_vm3, %v1035_v63  ;;  %v1049_v3 = vsel %vm585_vm4, %v3016_v5, %v1048_v9 }
 0x352   :  { %v1029_v8 = vadd.f32 %v2407_v34, %v1021_v7 }
 0x354   :  { %v1033_v10 = vmax.f32 %v1029_v8, 0.0 }
 0x356   :  { %v1050_v11 = vrot.slane %v1033_v10, 4  ;;  %v1122_v12 = vpack.c.bf16 %v1033_v10, %v1032_v61 }
 0x358   :  { %2226 = vmatmul.msk.bf16.gmra.mxu2 %vm439_vm3, %v1122_v12  ;;  %v1051_v13 = vsel %vm585_vm4, %v1048_v9, %v1050_v11 }
 0x359   :  { %v1055_v14 = vpack.c.bf16 %v1051_v13, %v1049_v3 }
 0x35b   :  { %2214 = vmatmul.msk.bf16.gmra.mxu0 %vm439_vm3, %v1055_v14 }
 0x3bd   :  { %v1111_v17 = vpop.f32.mrf.mxu1 }
 0x3c5   :  { %v1113_v23 = vpop.f32.mrf.mxu1 }
 0x3c8   :  { %v1080_v18 = vpop.f32.mrf.mxu0 }
 0x3c9   :  { %v1112_v20 = vadd.f32 %v1111_v17, %v1080_v18 }
 0x3cb   :  { %v1147_v22 = vpop.f32.mrf.mxu2 }
 0x3cc   :  { %v1157_v24 = vadd.f32 %v1147_v22, %v1112_v20 }
 0x3cd   :  { %v1116_v35 = vpop.f32.mrf.mxu1 }
 0x3ce   :  { %v1165_v5 = vadd.f32 %v2408_v21, %v1157_v24  ;;  %v3167_v24 = vld [vmem:[#allocation20 + $0x10] sm:$0xff] }
 0x3cf   :  { %1457 = vmatpush.bf16.msra.mxu0 %v3167_v24 }
 0x3d0   :  { %v1169_v25 = vmax.f32 %v1165_v5, 0.0  ;;  %v1082_v27 = vpop.f32.mrf.mxu0  ;;  %v3169_v5 = vld [vmem:[#allocation20 + $0x20] sm:$0xff] }
 0x3d1   :  { %v1114_v1 = vadd.f32 %v1113_v23, %v1082_v27  ;;  %1505 = vmatpush.bf16.msra.mxu2 %v3169_v5  ;;  %v3179_v27 = vld [vmem:[#allocation20 + $0x30] sm:$0xff] }
 0x3d2   :  { %v1173_v30 = vadd.f32 %v1169_v25, %v3072_v55  ;;  %v3172_v25 = vld [vmem:[#allocation20 + $0x18] sm:$0xff] }
 0x3d3   :  { %v1149_v31 = vpop.f32.mrf.mxu2  ;;  %1481 = vmatpush.bf16.msra.mxu1 %v3172_v25 }
 0x3d4   :  { %v3128_v32 = vmax.f32 %v1173_v30, 0.0  ;;  %v1158_v33 = vadd.f32 %v1149_v31, %v1114_v1  ;;  %v3190_v30 = vld [vmem:[%s3305_s18] ss:$0 sm:$0xff] }
 0x3d5   :  { %v1118_v44 = vpop.f32.mrf.mxu1 }
 0x3d6   :  { %v1181_v34 = vpack.c.bf16 %v3128_v32, %v2763_v0  ;;  %v1166_v36 = vadd.f32 %v2408_v21, %v1158_v33 }
 0x3d8   :  { %v1170_v37 = vmax.f32 %v1166_v36, 0.0  ;;  %v1085_v2 = vpop.f32.mrf.mxu0  ;;  %2237 = vmatmul.msk.bf16.vlgmr.msrb.gmra.mxu0 %vm439_vm3, %v1181_v34 }
 0x3d9   :  { %v1117_v38 = vadd.f32 %v1116_v35, %v1085_v2  ;;  %1553 = vmatpush.bf16.msrb.mxu0 %v3179_v27 }
 0x3da   :  { %v3134_v39 = vadd.f32 %v1170_v37, %v3079_v6 }
 0x3db   :  { %v1152_v55 = vpop.f32.mrf.mxu2 }
 0x3dc   :  { %v1178_v40 = vmax.f32 %v3134_v39, 0.0  ;;  %v1159_v41 = vadd.f32 %v1152_v55, %v1117_v38 }
 0x3de   :  { %v1186_v42 = vpack.c.bf16 %v1178_v40, %v3128_v32  ;;  %v1167_v43 = vadd.f32 %v2408_v21, %v1159_v41  ;;  %v3195_v41 = vld [vmem:[#allocation20 + $0x28] sm:$0xff] }
 0x3e0   :  { %v1171_v45 = vmax.f32 %v1167_v43, 0.0  ;;  %v1087_v46 = vpop.f32.mrf.mxu0  ;;  %2231 = vmatmul.msk.bf16.vlgmr.msra.gmra.mxu3 %vm439_vm3, %v1186_v42  ;;  %v3197_v43 = vld [vmem:[#allocation20 + $0x50] sm:$0xff] }
 0x3e1   :  { %v1119_v47 = vadd.f32 %v1118_v44, %v1087_v46  ;;  %v3199_v44 = vld [vmem:[#allocation20 + $0x60] sm:$0xff] }
 0x3e2   :  { %v1175_v48 = vadd.f32 %v1171_v45, %v3090_v19 }
 0x3e3   :  { %v1154_v49 = vpop.f32.mrf.mxu2 }
 0x3e4   :  { %v3142_v6 = vmax.f32 %v1175_v48, 0.0  ;;  %v1160_v50 = vadd.f32 %v1154_v49, %v1119_v47 }
 0x3e6   :  { %v1168_v51 = vadd.f32 %v2408_v21, %v1160_v50  ;;  %v1182_v52 = vpack.c.bf16 %v3142_v6, %v2763_v0 }
 0x3e8   :  { %v1172_v53 = vmax.f32 %v1168_v51, 0.0  ;;  %2238 = vmatmul.msk.bf16.gmra.mxu0 %vm439_vm3, %v1182_v52 }
 0x3ea   :  { %v3148_v56 = vadd.f32 %v1172_v53, %v3096_v26  ;;  %v3214_v53 = vld [vmem:[#allocation20 + $0x48] sm:$0xff] }
 0x3ec   :  { %v1180_v57 = vmax.f32 %v3148_v56, 0.0 }
 0x3ee   :  { %v1187_v19 = vpack.c.bf16 %v1180_v57, %v3142_v6 }
 0x3f0   :  { %2232 = vmatmul.msk.bf16.gmra.mxu3 %vm439_vm3, %v1187_v19  ;;  %v3216_v19 = vld [vmem:[#allocation20 + $0x70] sm:$0xff] }
 0x455   :  { %v1243_v58 = vpop.f32.mrf.mxu0 }
 0x45d   :  { %v1245_v26 = vpop.f32.mrf.mxu0 }
 0x463   :  { %v1212_v60 = vpop.f32.mrf.mxu3 }
 0x464   :  { %v1244_v61 = vadd.f32 %v1243_v58, %v1212_v60  ;;  %v3220_v60 = vld [vmem:[#allocation20 + $0x78] sm:$0xff] }
 0x465   :  { %v1248_v11 = vpop.f32.mrf.mxu0 }
 0x466   :  { %v1257_v62 = vadd.f32 %v2409_v59, %v1244_v61 }
 0x468   :  { %v1261_v63 = vmax.f32 %v1257_v62, 0.0 }
 0x46a   :  { %v1265_v4 = vpack.c.bf16 %v1261_v63, %v2763_v0 }
 0x46b   :  { %v1214_v7 = vpop.f32.mrf.mxu3 }
 0x46c   :  { %v1246_v8 = vadd.f32 %v1245_v26, %v1214_v7  ;;  %2249 = vmatmul.msk.bf16.vlgmr.msrb.gmra.mxu2 %vm439_vm3, %v1265_v4  ;;  %v3228_v26 = vld [vmem:[#allocation20 + $0x68] sm:$0xff] }
 0x46d   :  { %v1250_v17 = vpop.f32.mrf.mxu0  ;;  %1601 = vmatpush.bf16.msrb.mxu2 %v3181_v28 }
 0x46e   :  { %v1258_v9 = vadd.f32 %v2409_v59, %v1246_v8 }
 0x470   :  { %v1262_v10 = vmax.f32 %v1258_v9, 0.0 }
 0x472   :  { %v1270_v12 = vpack.c.bf16 %v1262_v10, %v1261_v63 }
 0x473   :  { %v1217_v3 = vpop.f32.mrf.mxu3 }
 0x474   :  { %v1249_v13 = vadd.f32 %v1248_v11, %v1217_v3  ;;  %2243 = vmatmul.msk.bf16.vlgmr.msrb.gmra.mxu1 %vm439_vm3, %v1270_v12 }
 0x475   :  { %1577 = vmatpush.bf16.msrb.mxu1 %v3185_v29 }
 0x476   :  { %v1259_v14 = vadd.f32 %v2409_v59, %v1249_v13 }
 0x478   :  { %v1263_v15 = vmax.f32 %v1259_v14, 0.0 }
 0x47a   :  { %v1266_v16 = vpack.c.bf16 %v1263_v15, %v2763_v0  ;;  %v3176_v0 = vld [vmem:[#allocation20 + $0x8] sm:$0xff] }
 0x47b   :  { %v1219_v18 = vpop.f32.mrf.mxu3  ;;  %1432 = vmatpush.bf16.msra.mxu3 %v3176_v0 }
 0x47c   :  { %v1251_v20 = vadd.f32 %v1250_v17, %v1219_v18  ;;  %2250 = vmatmul.msk.bf16.gmra.mxu2 %vm439_vm3, %v1266_v16 }
 0x47e   :  { %v1260_v21 = vadd.f32 %v2409_v59, %v1251_v20 }
 0x480   :  { %v1264_v22 = vmax.f32 %v1260_v21, 0.0 }
 0x482   :  { %v1271_v23 = vpack.c.bf16 %v1264_v22, %v1263_v15 }
 0x484   :  { %2244 = vmatmul.msk.bf16.gmra.mxu1 %vm439_vm3, %v1271_v23 }
 0x4ef   :  { %v1327_v1 = vpop.f32.mrf.mxu2 }
 0x4f1   :  { %v1296_v31 = vpop.f32.mrf.mxu1 }
 0x4f2   :  { %v1328_v33 = vadd.f32 %v1327_v1, %v1296_v31 }
 0x4f4   :  { %v1341_v34 = vadd.f32 %v3190_v30, %v1328_v33 }
 0x4f6   :  { %v1345_v35 = vmax.f32 %v1341_v34, 0.0 }
 0x4f7   :  { %v1329_v37 = vpop.f32.mrf.mxu2 }
 0x4f8   :  { %v1349_v36 = vadd.f32 %v1345_v35, %v3128_v32  ;;  %v3204_v32 = vld [vmem:[#allocation20 + $0x58] sm:$0xff] }
 0x4f9   :  { %v1298_v2 = vpop.f32.mrf.mxu1 }
 0x4fa   :  { %v1353_v38 = vmax.f32 %v1349_v36, 0.0  ;;  %v1330_v55 = vadd.f32 %v1329_v37, %v1298_v2 }
 0x4fc   :  { %v1390_v42 = vpack.c.bf16 %v1353_v38, %v1353_v38  ;;  %v1342_v46 = vadd.f32 %v3190_v30, %v1330_v55 }
 0x4fe   :  { %v1414_v45 = vshrl.u32 %v1390_v42, 16  ;;  %2255 = vmatmul.msk.bf16.vlgmr.msrb.gmra.mxu3 %vm439_vm3, %v1390_v42  ;;  %v1440_v47 = vrot.slane %v1390_v42, 1  ;;  %v1488_v48 = vrot.slane %v1390_v42, 2  ;;  %v1346_v50 = vmax.f32 %v1342_v46, 0.0  ;;  %v1389_v46 = vld [vmem:[%s3307_s20] sm:$0x1] }
 0x4ff   :  { %1529 = vmatpush.bf16.msrb.mxu3 %v3195_v41  ;;  %v1536_v59 = vrot.slane %v1390_v42, 3  ;;  %s2764_s20 = smov [#allocation22]  }
 0x500   :  { %2265 = vmatmul.msk.bf16.vlgmr.msra.gmra.mxu0 %vm439_vm3, %v1440_v47  ;;  %2275 = vmatmul.msk.bf16.vlgmr.msra.gmra.mxu2 %vm439_vm3, %v1488_v48  ;;  %v1464_v49 = vrot.slane %v1414_v45, 1  ;;  %v1350_v51 = vadd.f32 %v1346_v50, %v1178_v40  ;;  %v1560_v61 = vrot.slane %v1414_v45, 3  ;;  %v1332_v40 = vpop.f32.mrf.mxu2  ;;  %v1512_v4 = vrot.slane %v1414_v45, 2  ;;  %s2100_s24 = sshll.u32 %s2764_s20, 4  ;;  %s2101_s24 = int_to_ptr.vmem [resolvable:$true] %s2100_s24 }
 0x501   :  { %1651 = vmatpush.bf16.msra.mxu0 %v3197_v43  ;;  %1699 = vmatpush.bf16.msra.mxu2 %v3199_v44  ;;  %v1301_v39 = vpop.f32.mrf.mxu1 }
 0x502   :  { %2270 = vmatmul.msk.bf16.vlgmr.msra.gmra.mxu1 %vm439_vm3, %v1464_v49  ;;  %v1354_v52 = vmax.f32 %v1350_v51, 0.0  ;;  %v1333_v62 = vadd.f32 %v1332_v40, %v1301_v39 }
 0x503   :  { %1675 = vmatpush.bf16.msra.mxu1 %v3204_v32 }
 0x504   :  { %v1584_v58 = vpack.c.bf16 %v1354_v52, %v1354_v52  ;;  %v1343_v7 = vadd.f32 %v3190_v30, %v1333_v62 }
 0x506   :  { %v1608_v63 = vshrl.u32 %v1584_v58, 16  ;;  %v1634_v8 = vrot.slane %v1584_v58, 1  ;;  %v1682_v9 = vrot.slane %v1584_v58, 2  ;;  %v1347_v10 = vmax.f32 %v1343_v7, 0.0 }
 0x507   :  { %v1730_v13 = vrot.slane %v1584_v58, 3 }
 0x508   :  { %v1351_v11 = vadd.f32 %v1347_v10, %v3142_v6  ;;  %v1754_v14 = vrot.slane %v1608_v63, 3  ;;  %v1334_v15 = vpop.f32.mrf.mxu2  ;;  %v1706_v18 = vrot.slane %v1608_v63, 2 }
 0x509   :  { %v1303_v6 = vpop.f32.mrf.mxu1 }
 0x50a   :  { %v1355_v12 = vmax.f32 %v1351_v11, 0.0  ;;  %v1335_v16 = vadd.f32 %v1334_v15, %v1303_v6 }
 0x50c   :  { %v1791_v3 = vpack.c.bf16 %v1355_v12, %v1355_v12  ;;  %v1344_v20 = vadd.f32 %v3190_v30, %v1335_v16 }
 0x50e   :  { %2260 = vmatmul.msk.bf16.vlgmr.msra.gmra.mxu3 %vm439_vm3, %v1414_v45  ;;  %v1809_v17 = vshrl.u32 %v1791_v3, 16  ;;  %v1829_v21 = vrot.slane %v1791_v3, 1  ;;  %v1865_v22 = vrot.slane %v1791_v3, 2 }
 0x50f   :  { %1626 = vmatpush.bf16.msra.mxu3 %v3214_v53 }
 0x510   :  { %2285 = vmatmul.msk.bf16.vlgmr.msrb.gmra.mxu0 %vm439_vm3, %v1536_v59  ;;  %2295 = vmatmul.msk.bf16.vlgmr.msrb.gmra.mxu2 %vm439_vm3, %v1584_v58  ;;  %v1847_v23 = vrot.slane %v1809_v17, 1 }
 0x511   :  { %1747 = vmatpush.bf16.msrb.mxu0 %v3216_v19  ;;  %1802 = vmatpush.bf16.msrb.mxu2 %v3158_v54  ;;  %v1658_v54 = vrot.slane %v1608_v63, 1 }
 0x512   :  { %2290 = vmatmul.msk.bf16.vlgmr.msrb.gmra.mxu1 %vm439_vm3, %v1560_v61 }
 0x513   :  { %1771 = vmatpush.bf16.msrb.mxu1 %v3220_v60 }
 0x51e   :  { %2280 = vmatmul.msk.bf16.vlgmr.msrb.gmra.mxu3 %vm439_vm3, %v1512_v4 }
 0x51f   :  { %1723 = vmatpush.bf16.msrb.mxu3 %v3228_v26 }
 0x520   :  { %2305 = vmatmul.msk.bf16.vlgmr.msra.gmra.mxu0 %vm439_vm3, %v1634_v8  ;;  %2315 = vmatmul.msk.bf16.vlgmr.msra.gmra.mxu2 %vm439_vm3, %v1682_v9 }
 0x521   :  { %1840 = vmatpush.bf16.msra.mxu0 %v3167_v24  ;;  %1876 = vmatpush.bf16.msra.mxu2 %v3169_v5  ;;  %v1348_v24 = vmax.f32 %v1344_v20, 0.0 }
 0x522   :  { %2310 = vmatmul.msk.bf16.vlgmr.msra.gmra.mxu1 %vm439_vm3, %v1658_v54 }
 0x523   :  { %1858 = vmatpush.bf16.msra.mxu1 %v3172_v25  ;;  %v1352_v5 = vadd.f32 %v1348_v24, %v1180_v57  ;;  %v1883_v57 = vrot.slane %v1809_v17, 2 }
 0x525   :  { %v1356_v25 = vmax.f32 %v1352_v5, 0.0 }
 0x52e   :  { %2300 = vmatmul.msk.bf16.vlgmr.msra.gmra.mxu3 %vm439_vm3, %v1608_v63 }
 0x52f   :  { %1821 = vmatpush.bf16.msra.mxu3 %v3176_v0  ;;  %v1937_v0 = vpack.c.bf16 %v1356_v25, %v1356_v25 }
 0x530   :  { %2325 = vmatmul.msk.bf16.vlgmr.msrb.gmra.mxu0 %vm439_vm3, %v1730_v13  ;;  %2331 = vmatmul.msk.bf16.vlgmr.msrb.gmra.mxu2 %vm439_vm3, %v1791_v3 }
 0x531   :  { %1912 = vmatpush.bf16.msrb.mxu0 %v3179_v27  ;;  %1948 = vmatpush.bf16.msrb.mxu2 %v3181_v28  ;;  %v1901_v27 = vrot.slane %v1791_v3, 3  ;;  %v1919_v28 = vrot.slane %v1809_v17, 3  ;;  %v1955_v56 = vshrl.u32 %v1937_v0, 16  ;;  %v2011_v1 = vrot.slane %v1937_v0, 2 }
 0x532   :  { %2330 = vmatmul.msk.bf16.vlgmr.msrb.gmra.mxu1 %vm439_vm3, %v1754_v14  ;;  %v2047_v31 = vrot.slane %v1937_v0, 3 }
 0x533   :  { %1930 = vmatpush.bf16.msrb.mxu1 %v3185_v29  ;;  %v1975_v29 = vrot.slane %v1937_v0, 1  ;;  %v1993_v30 = vrot.slane %v1955_v56, 1  ;;  %v2065_v33 = vrot.slane %v1955_v56, 3  ;;  %v2029_v34 = vrot.slane %v1955_v56, 2 }
 0x53e   :  { %2320 = vmatmul.msk.bf16.vlgmr.msrb.gmra.mxu3 %vm439_vm3, %v1706_v18 }
 0x53f   :  { %1894 = vmatpush.bf16.msrb.mxu3 %v3195_v41 }
 0x540   :  { %2333 = vmatmul.msk.bf16.vlgmr.msra.gmra.mxu0 %vm439_vm3, %v1829_v21  ;;  %2335 = vmatmul.msk.bf16.vlgmr.msra.gmra.mxu2 %vm439_vm3, %v1865_v22 }
 0x541   :  { %1986 = vmatpush.bf16.msra.mxu0 %v3197_v43  ;;  %2022 = vmatpush.bf16.msra.mxu2 %v3199_v44 }
 0x542   :  { %2334 = vmatmul.msk.bf16.vlgmr.msra.gmra.mxu1 %vm439_vm3, %v1847_v23 }
 0x543   :  { %2004 = vmatpush.bf16.msra.mxu1 %v3204_v32 }
 0x54e   :  { %2332 = vmatmul.msk.bf16.vlgmr.msra.gmra.mxu3 %vm439_vm3, %v1809_v17 }
 0x54f   :  { %1967 = vmatpush.bf16.msra.mxu3 %v3214_v53 }
 0x550   :  { %2337 = vmatmul.msk.bf16.vlgmr.msrb.gmra.mxu0 %vm439_vm3, %v1901_v27  ;;  %2339 = vmatmul.msk.bf16.vlgmr.msrb.gmra.mxu2 %vm439_vm3, %v1937_v0 }
 0x551   :  { %2058 = vmatpush.bf16.msrb.mxu0 %v3216_v19 }
 0x552   :  { %2338 = vmatmul.msk.bf16.vlgmr.msrb.gmra.mxu1 %vm439_vm3, %v1919_v28 }
 0x553   :  { %2076 = vmatpush.bf16.msrb.mxu1 %v3220_v60 }
 0x55e   :  { %2336 = vmatmul.msk.bf16.vlgmr.msrb.gmra.mxu3 %vm439_vm3, %v1883_v57 }
 0x55f   :  { %2040 = vmatpush.bf16.msrb.mxu3 %v3228_v26 }
 0x560   :  { %2341 = vmatmul.msk.bf16.vlgmr.msra.gmra.mxu0 %vm439_vm3, %v1975_v29  ;;  %2343 = vmatmul.msk.bf16.vlgmr.msra.gmra.mxu2 %vm439_vm3, %v2011_v1 }
 0x562   :  { %2342 = vmatmul.msk.bf16.vlgmr.msra.gmra.mxu1 %vm439_vm3, %v1993_v30 }
 0x56e   :  { %2340 = vmatmul.msk.bf16.vlgmr.msra.gmra.mxu3 %vm439_vm3, %v1955_v56 }
 0x570   :  { %2345 = vmatmul.msk.bf16.vlgmr.msrb.gmra.mxu0 %vm439_vm3, %v2047_v31 }
 0x572   :  { %2346 = vmatmul.msk.bf16.vlgmr.msrb.gmra.mxu1 %vm439_vm3, %v2065_v33 }
 0x57d   :  { %v1459_v35 = vpop.f32.mrf.mxu0 }
 0x57e   :  { %2344 = vmatmul.msk.bf16.vlgmr.msrb.gmra.mxu3 %vm439_vm3, %v2029_v34 }
 0x57f   :  { %v1483_v36 = vpop.f32.mrf.mxu1 }
 0x581   :  { %v1409_v37 = vpop.f32.mrf.mxu3 }
 0x582   :  { %v1413_v32 = vadd.f32 %v1409_v37, %v1389_v46 }
 0x583   :  { %v1507_v2 = vpop.f32.mrf.mxu2 }
 0x585   :  { %v1461_v38 = vpop.f32.mrf.mxu0 }
 0x587   :  { %v1485_v55 = vpop.f32.mrf.mxu1 }
 0x589   :  { %v1411_v41 = vpop.f32.mrf.mxu3 }
 0x58b   :  { %v1509_v42 = vpop.f32.mrf.mxu2 }
 0x58d   :  { %v1555_v43 = vpop.f32.mrf.mxu0 }
 0x58f   :  { %v1579_v44 = vpop.f32.mrf.mxu1 }
 0x591   :  { %v1434_v45 = vpop.f32.mrf.mxu3 }
 0x592   :  { %v1438_v50 = vadd.f32 %v1434_v45, %v1413_v32 }
 0x593   :  { %v1603_v47 = vpop.f32.mrf.mxu2 }
 0x594   :  { %v1463_v53 = vadd.f32 %v1459_v35, %v1438_v50 }
 0x595   :  { %v1557_v48 = vpop.f32.mrf.mxu0 }
 0x596   :  { %v1487_v59 = vadd.f32 %v1483_v36, %v1463_v53 }
 0x597   :  { %v1581_v49 = vpop.f32.mrf.mxu1 }
 0x598   :  { %v1511_v39 = vadd.f32 %v1507_v2, %v1487_v59 }
 0x599   :  { %v1436_v51 = vpop.f32.mrf.mxu3 }
 0x59b   :  { %v1605_v52 = vpop.f32.mrf.mxu2 }
 0x59d   :  { %v1653_v19 = vpop.f32.mrf.mxu0 }
 0x59f   :  { %v1677_v58 = vpop.f32.mrf.mxu1 }
 0x5a1   :  { %v1531_v60 = vpop.f32.mrf.mxu3 }
 0x5a2   :  { %v1535_v62 = vadd.f32 %v1531_v60, %v1511_v39 }
 0x5a3   :  { %v1701_v61 = vpop.f32.mrf.mxu2 }
 0x5a4   :  { %v1559_v4 = vadd.f32 %v1555_v43, %v1535_v62 }
 0x5a5   :  { %v1655_v40 = vpop.f32.mrf.mxu0 }
 0x5a6   :  { %v1583_v9 = vadd.f32 %v1579_v44, %v1559_v4 }
 0x5a7   :  { %v1679_v26 = vpop.f32.mrf.mxu1 }
 0x5a8   :  { %v1607_v11 = vadd.f32 %v1603_v47, %v1583_v9 }
 0x5a9   :  { %v1533_v63 = vpop.f32.mrf.mxu3 }
 0x5ab   :  { %v1703_v7 = vpop.f32.mrf.mxu2 }
 0x5ad   :  { %v1749_v8 = vpop.f32.mrf.mxu0 }
 0x5af   :  { %v1773_v54 = vpop.f32.mrf.mxu1 }
 0x5b1   :  { %v1628_v10 = vpop.f32.mrf.mxu3 }
 0x5b2   :  { %v1632_v3 = vadd.f32 %v1628_v10, %v1607_v11 }
 0x5b3   :  { %v1804_v12 = vpop.f32.mrf.mxu2 }
 0x5b4   :  { %v1657_v6 = vadd.f32 %v1653_v19, %v1632_v3  ;;  %v1808_v34 = vadd.f32 %v1804_v12, %v1389_v46 }
 0x5b5   :  { %v1751_v13 = vpop.f32.mrf.mxu0 }
 0x5b6   :  { %v1681_v17 = vadd.f32 %v1677_v58, %v1657_v6 }
 0x5b7   :  { %v1775_v14 = vpop.f32.mrf.mxu1 }
 0x5b8   :  { %v1705_v21 = vadd.f32 %v1701_v61, %v1681_v17 }
 0x5b9   :  { %v1630_v15 = vpop.f32.mrf.mxu3 }
 0x5bb   :  { %v1806_v16 = vpop.f32.mrf.mxu2 }
 0x5bd   :  { %v1842_v18 = vpop.f32.mrf.mxu0 }
 0x5bf   :  { %v1860_v20 = vpop.f32.mrf.mxu1 }
 0x5c1   :  { %v1725_v22 = vpop.f32.mrf.mxu3 }
 0x5c2   :  { %v1729_v23 = vadd.f32 %v1725_v22, %v1705_v21 }
 0x5c3   :  { %v1878_v24 = vpop.f32.mrf.mxu2 }
 0x5c4   :  { %v1753_v5 = vadd.f32 %v1749_v8, %v1729_v23 }
 0x5c5   :  { %v1844_v25 = vpop.f32.mrf.mxu0 }
 0x5c6   :  { %v1777_v0 = vadd.f32 %v1773_v54, %v1753_v5 }
 0x5c7   :  { %v1862_v27 = vpop.f32.mrf.mxu1 }
 0x5c8   :  { %v1779_v28 = vsel %vm1778_vm5, %v1777_v0, -inf }
 0x5c9   :  { %1780 = vmax.xlane.f32.xlu0 %v1779_v28  ;;  %v1727_v56 = vpop.f32.mrf.mxu3 }
 0x5cb   :  { %v1880_v57 = vpop.f32.mrf.mxu2 }
 0x5cd   :  { %v1914_v29 = vpop.f32.mrf.mxu0 }
 0x5cf   :  { %v1932_v1 = vpop.f32.mrf.mxu1 }
 0x5d1   :  { %v1823_v30 = vpop.f32.mrf.mxu3 }
 0x5d2   :  { %v1827_v36 = vadd.f32 %v1823_v30, %v1808_v34 }
 0x5d3   :  { %v1950_v31 = vpop.f32.mrf.mxu2 }
 0x5d4   :  { %v1846_v38 = vadd.f32 %v1842_v18, %v1827_v36 }
 0x5d5   :  { %v1916_v33 = vpop.f32.mrf.mxu0 }
 0x5d6   :  { %v1864_v42 = vadd.f32 %v1860_v20, %v1846_v38 }
 0x5d7   :  { %v1934_v35 = vpop.f32.mrf.mxu1 }
 0x5d8   :  { %v1882_v45 = vadd.f32 %v1878_v24, %v1864_v42 }
 0x5d9   :  { %v1825_v37 = vpop.f32.mrf.mxu3 }
 0x5db   :  { %v1952_v2 = vpop.f32.mrf.mxu2 }
 0x5dd   :  { %v1988_v55 = vpop.f32.mrf.mxu0 }
 0x5df   :  { %v2006_v41 = vpop.f32.mrf.mxu1 }
 0x5e1   :  { %v1896_v43 = vpop.f32.mrf.mxu3 }
 0x5e2   :  { %v1900_v48 = vadd.f32 %v1896_v43, %v1882_v45 }
 0x5e3   :  { %v2024_v44 = vpop.f32.mrf.mxu2 }
 0x5e4   :  { %v1918_v50 = vadd.f32 %v1914_v29, %v1900_v48 }
 0x5e5   :  { %v1990_v47 = vpop.f32.mrf.mxu0 }
 0x5e6   :  { %v1936_v53 = vadd.f32 %v1932_v1, %v1918_v50 }
 0x5e7   :  { %v2008_v32 = vpop.f32.mrf.mxu1 }
 0x5e8   :  { %v1954_v58 = vadd.f32 %v1950_v31, %v1936_v53 }
 0x5e9   :  { %v1898_v49 = vpop.f32.mrf.mxu3 }
 0x5eb   :  { %v2026_v51 = vpop.f32.mrf.mxu2 }
 0x5ed   :  { %v2060_v52 = vpop.f32.mrf.mxu0 }
 0x5ef   :  { %v2078_v46 = vpop.f32.mrf.mxu1 }
 0x5f1   :  { %v1969_v19 = vpop.f32.mrf.mxu3 }
 0x5f2   :  { %v1973_v59 = vadd.f32 %v1969_v19, %v1954_v58 }
 0x5f4   :  { %v1992_v39 = vadd.f32 %v1988_v55, %v1973_v59 }
 0x5f5   :  { %v2062_v60 = vpop.f32.mrf.mxu0 }
 0x5f6   :  { %v2010_v62 = vadd.f32 %v2006_v41, %v1992_v39 }
 0x5f7   :  { %v2080_v61 = vpop.f32.mrf.mxu1 }
 0x5f8   :  { %v2028_v26 = vadd.f32 %v2024_v44, %v2010_v62 }
 0x5f9   :  { %v1971_v40 = vpop.f32.mrf.mxu3 }
 0x601   :  { %v2042_v63 = vpop.f32.mrf.mxu3 }
 0x602   :  { %v2046_v4 = vadd.f32 %v2042_v63, %v2028_v26 }
 0x604   :  { %v2064_v7 = vadd.f32 %v2060_v52, %v2046_v4 }
 0x606   :  { %v2082_v8 = vadd.f32 %v2078_v46, %v2064_v7 }
 0x608   :  { %v2083_v9 = vsel %vm1778_vm5, %v2082_v8, -inf }
 0x609   :  { %2084 = vmax.xlane.f32.xlu0 %v2083_v9  ;;  %v2044_v54 = vpop.f32.mrf.mxu3 }
 0x63c   :  { %v1781_v10 = vpop.xlane.xlu0 %1780 }
 0x63d   :  { %v1782_v11 = vsub.f32 %v1777_v0, %v1781_v10 }
 0x63f   :  { %v1783_v12 = vmul.f32 1.442695, %v1782_v11 }
 0x641   :  { %2411 = vpow2.f32 %v1783_v12 }
 0x647   :  { %v2412_v3 = vpop.eup %2411 }
 0x648   :  { %v1785_v13 = vsel %vm1778_vm5, %v2412_v3, 0.0 }
 0x649   :  { %1786 = vadd.xlane.f32.xlu1 %v1785_v13 }
 0x67c   :  { %v2085_v14 = vpop.xlane.xlu0 %2084 }
 0x67d   :  { %v2086_v6 = vsub.f32 %v2082_v8, %v2085_v14 }
 0x67f   :  { %v2087_v15 = vmul.f32 1.442695, %v2086_v6 }
 0x681   :  { %2413 = vpow2.f32 %v2087_v15 }
 0x687   :  { %v2414_v16 = vpop.eup %2413 }
 0x688   :  { %v2089_v17 = vsel %vm1778_vm5, %v2414_v16, 0.0 }
 0x689   :  { %2090 = vadd.xlane.f32.xlu1 %v2089_v17 }
 0x6bc   :  { %v1787_v18 = vpop.xlane.xlu1 %1786 }
 0x6bd   :  { %2415 = vrcp.f32 %v1787_v18 }
 0x6c3   :  { %v2416_v20 = vpop.eup %2415 }
 0x6c4   :  { %v1789_v21 = vmul.f32 %v2416_v20, %v2412_v3 }
 0x6c6   :  { %1790 = vst.msk [vmem:[#allocation22] sm:$0x1] %vm1778_vm5, %v1789_v21 }
 0x6fc   :  { %v2091_v22 = vpop.xlane.xlu1 %2090 }
 0x6fd   :  { %2417 = vrcp.f32 %v2091_v22 }
 0x703   :  { %v2418_v23 = vpop.eup %2417 }
 0x704   :  { %v2093_v24 = vmul.f32 %v2418_v23, %v2414_v16 }
 0x706   :  { %2095 = vst.msk [vmem:[#allocation22 + $0x1] sm:$0x1] %vm1778_vm5, %v2093_v24 }
 0x707   :  { %2108 = dma.vmem_to_hbm [thread:$0]  %s2101_s24, 32, %s2103_s25, [#allocation4], %s2765_s26, %s2765_s26, %s2766_s3  }
 0x708   :  { %2745 = dma.done.wait [#allocation4], 32  }
 0x709   :  { %2746 = vsyncadd [#allocation4], 4294967264 }
 0x70a   :  { %2113 = vsyncpa [#allocation3], 1 }
 0x70b   :  { %2114 = vsyncpa [#allocation6], 1 }
 0x70c   :  { %2115 = vsyncpa [#allocation9], 1 }
 0x70d   :  { %2116 = vsyncpa [#allocation12], 1 }
 0x70e   :  { %2117 = vsyncpa [#allocation15], 1 }
 0x70f   :  { %2118 = vsyncpa [#allocation18], 1 }
 0x710   :  { %2119 = vsyncpa [#allocation21], 1 }
 0x711   :  { %2120 = vsyncpa [#allocation4], 1 }

</bundles_post_ra>
